<compile_context>
chip_gen: v5e
topology: v5e:2x2
jax: 0.10.0
libtpu: 0.0.40
codegen_flags: <defaults>
</compile_context>

<pallas_src>
import functools

import jax
import jax.numpy as jnp
from jax import lax
from jax.experimental import pallas as pl
from jax.experimental.pallas import tpu as pltpu


def _supcon_tile_kernel(*refs, use_labels, n_contrast, inv_temp, loss_scale, eps):
    if use_labels:
        (alab_ref, clab_ref, a_ref, c_ref,
         loss_ref, msum_ref, m_scr, l_scr, s1_scr, s0_scr) = refs
    else:
        (pmask_ref, a_ref, c_ref,
         loss_ref, msum_ref, m_scr, l_scr, s1_scr, s0_scr) = refs

    tm = a_ref.shape[0]
    tk = c_ref.shape[0]
    i = pl.program_id(0)
    k = pl.program_id(1)

    # ---- init running accumulators for this anchor block ----
    @pl.when(k == 0)
    def _init():
        m_scr[...] = jnp.full_like(m_scr, -1e30)
        l_scr[...] = jnp.zeros_like(l_scr)
        s1_scr[...] = jnp.zeros_like(s1_scr)
        s0_scr[...] = jnp.zeros_like(s0_scr)

    a = a_ref[...].astype(jnp.float32)      # [tm, Dp]
    c = c_ref[...].astype(jnp.float32)      # [tk, Dp]

    # L2 normalize (== F.normalize eps=1e-12); fold 1/temperature into the anchor
    # scale so no N^2 multiply is needed on the logits tile.
    a_inv = lax.rsqrt(jnp.maximum(jnp.sum(a * a, axis=1, keepdims=True), 1e-24))
    c_inv = lax.rsqrt(jnp.maximum(jnp.sum(c * c, axis=1, keepdims=True), 1e-24))
    a_bf = (a * (a_inv * inv_temp)).astype(jnp.bfloat16)
    c_bf = (c * c_inv).astype(jnp.bfloat16)

    # sims == (anchor . contrast^T) / temperature ; bf16 MXU, f32 accumulation,
    # contraction on dim 1 of both operands (no transpose of the RHS).
    sims = lax.dot_general(a_bf, c_bf, (((1,), (1,)), ((), ())),
                           preferred_element_type=jnp.float32)   # [tm, tk]

    row_g = i * tm + lax.broadcasted_iota(jnp.int32, (tm, tk), 0)
    col_g = k * tk + lax.broadcasted_iota(jnp.int32, (tm, tk), 1)
    valid_col = col_g < n_contrast          # drop zero-padded contrast columns
    not_self = row_g != col_g               # logits_mask (self-pair excluded)
    keep = jnp.logical_and(not_self, valid_col)

    # padded columns must not contribute to the row max / exp sums
    sims = jnp.where(valid_col, sims, -1e30)

    # positive-pair mask built in-kernel (no [Na, Nc] mask DMA'd from HBM)
    if use_labels:
        posf = jnp.logical_and(alab_ref[...] == clab_ref[...], keep).astype(jnp.float32)
    else:
        posf = pmask_ref[...] * keep.astype(jnp.float32)

    # ---- online (flash-style) log-sum-exp over the contrast axis ----
    block_max = jnp.max(sims, axis=1, keepdims=True)             # [tm, 1]
    m_new = jnp.maximum(m_scr[...], block_max)
    alpha = jnp.exp(m_scr[...] - m_new)
    p = jnp.exp(sims - m_new) * not_self.astype(jnp.float32)
    l_scr[...] = alpha * l_scr[...] + jnp.sum(p, axis=1, keepdims=True)
    # S1 / S0 live in unshifted space -> no rescaling needed
    s1_scr[...] += jnp.sum(posf * sims, axis=1, keepdims=True)
    s0_scr[...] += jnp.sum(posf, axis=1, keepdims=True)
    m_scr[...] = m_new

    # ---- finalize per-anchor loss ----
    @pl.when(k == pl.num_programs(1) - 1)
    def _finalize():
        s0 = s0_scr[...]
        # sum_j pos*log_prob = S1 - (M + log(l + eps)) * S0
        lse = m_scr[...] + jnp.log(l_scr[...] + eps)
        inv_s0 = pl.reciprocal(jnp.maximum(s0, eps), approx=True)
        mean_log_prob_pos = (s1_scr[...] - lse * s0) * inv_s0
        loss_ref[...] = loss_scale * mean_log_prob_pos
        msum_ref[...] = s0


def _round_up(x, m):
    return ((x + m - 1) // m) * m


def supcon_loss(features, labels=None, mask=None, *, temperature=0.07,
                contrast_mode='all', base_temperature=0.07,
                block_m=None, block_k=None):
    """JAX/Pallas equivalent of SupConLoss.forward. Returns a scalar float32 loss."""
    eps = 1e-8
    features = jnp.asarray(features)
    if features.ndim < 3:
        raise ValueError('`features` needs to be [bsz, n_views, ...]')
    bsz, n_views = features.shape[0], features.shape[1]
    feats = features.reshape(bsz, n_views, -1).astype(jnp.float32)
    d = feats.shape[-1]

    # TODO(synk): the PyTorch warning prints (NaN input / batch<2 / no valid pairs)
    # have no in-kernel equivalent; those guards still return 0.0, just silently.
    if bsz < 2:
        return jnp.float32(0.0)

    if labels is not None and mask is not None:
        raise ValueError('Cannot define both `labels` and `mask`')

    if contrast_mode == 'one':
        anchor_count = 1
    elif contrast_mode == 'all':
        anchor_count = n_views
    else:
        raise ValueError(f'Unknown mode: {contrast_mode}')

    n_contrast = bsz * n_views
    n_anchor = bsz * anchor_count

    # torch.cat(torch.unbind(features, dim=1), dim=0)  (view-major stacking).
    # anchor_feature == contrast[:n_anchor] for both 'one' and 'all'.
    contrast = jnp.swapaxes(feats, 0, 1).reshape(n_contrast, d)

    # Tile sizes: 128 keeps padding small / matches v5e MXU; 256 for big N (v6e/v7x).
    tm = block_m or (256 if n_anchor >= 512 else 128)
    tk = block_k or (256 if n_contrast >= 512 else 128)

    na_pad = _round_up(n_anchor, tm)
    nc_pad = _round_up(n_contrast, tk)
    d_pad = _round_up(d, 128)            # lane-dense K dim for the MXU
    rows_pad = max(na_pad, nc_pad)

    x_pad = jnp.zeros((rows_pad, d_pad), jnp.float32).at[:n_contrast, :d].set(contrast)

    grid = (na_pad // tm, nc_pad // tk)

    feat_specs = [
        pl.BlockSpec((tm, d_pad), lambda i, k: (i, 0)),   # anchor tile (same array)
        pl.BlockSpec((tk, d_pad), lambda i, k: (k, 0)),   # contrast tile
    ]
    out_specs = [
        pl.BlockSpec((tm, 1), lambda i, k: (i, 0)),       # per-anchor loss
        pl.BlockSpec((tm, 1), lambda i, k: (i, 0)),       # per-anchor positive count
    ]
    out_shape = (jax.ShapeDtypeStruct((na_pad, 1), jnp.float32),
                 jax.ShapeDtypeStruct((na_pad, 1), jnp.float32))
    scratch_shapes = [pltpu.VMEM((tm, 1), jnp.float32)] * 4   # m, l, S1, S0

    use_labels = mask is None
    if use_labels:
        if labels is None:
            lab = jnp.arange(bsz, dtype=jnp.int32)        # mask = eye  <=>  unique labels
        else:
            lab = jnp.asarray(labels).reshape(-1).astype(jnp.int32)
            if lab.shape[0] != bsz:
                raise ValueError('Num of labels does not match num of features')
        c_lab = jnp.tile(lab, n_views)                    # [Nc]
        a_lab = c_lab[:n_anchor]                          # [Na]
        lab_row = jnp.full((1, nc_pad), -1, jnp.int32).at[0, :n_contrast].set(c_lab)
        lab_col = jnp.full((na_pad, 1), -1, jnp.int32).at[:n_anchor, 0].set(a_lab)
        inputs = (lab_col, lab_row, x_pad, x_pad)
        in_specs = [
            pl.BlockSpec((tm, 1), lambda i, k: (i, 0)),
            pl.BlockSpec((1, tk), lambda i, k: (0, k)),
        ] + feat_specs
    else:
        # Arbitrary (possibly asymmetric / weighted) [bsz,bsz] mask: tile & pad it and
        # stream it block-wise (fallback path; the labels path never materializes it).
        pm = jnp.asarray(mask, jnp.float32)
        big = jnp.tile(pm, (anchor_count, n_views))       # [Na, Nc]
        big_pad = jnp.zeros((na_pad, nc_pad), jnp.float32).at[:n_anchor, :n_contrast].set(big)
        inputs = (big_pad, x_pad, x_pad)
        in_specs = [pl.BlockSpec((tm, tk), lambda i, k: (i, k))] + feat_specs

    kernel = functools.partial(
        _supcon_tile_kernel,
        use_labels=use_labels,
        n_contrast=n_contrast,
        inv_temp=float(1.0 / temperature),
        loss_scale=float(-(temperature / base_temperature)),
        eps=eps,
    )

    loss_rows, mask_sums = pl.pallas_call(
        kernel,
        out_shape=out_shape,
        grid_spec=pltpu.PrefetchScalarGridSpec(
            num_scalar_prefetch=0,
            grid=grid,
            in_specs=in_specs,
            out_specs=out_specs,
            scratch_shapes=scratch_shapes),
        compiler_params=pltpu.CompilerParams(
            dimension_semantics=("parallel", "arbitrary")),
    )(*inputs)

    # Tiny O(N) finalization in plain JAX (keeps the anchor grid axis fully parallel).
    loss_rows = loss_rows[:n_anchor, 0]
    mask_sums = mask_sums[:n_anchor, 0]
    valid = (mask_sums > eps).astype(jnp.float32)
    n_valid = jnp.sum(valid)
    loss = jnp.where(n_valid > 0.0,
                     jnp.sum(loss_rows * valid) / jnp.maximum(n_valid, 1.0),
                     jnp.float32(0.0))                    # "no valid positive pairs" -> 0
    loss = jnp.where(jnp.isnan(loss), jnp.float32(0.0), loss)
    loss = jnp.where(jnp.any(jnp.isnan(feats)), jnp.float32(0.0), loss)
    return loss


def _supcon_loss_ref(features, labels=None, mask=None, *, temperature=0.07,
                     contrast_mode='all', base_temperature=0.07):
    """Pure-JAX float32 reference mirroring the PyTorch forward (for sanity checks)."""
    eps = 1e-8
    bsz, n_views = features.shape[0], features.shape[1]
    feats = features.reshape(bsz, n_views, -1).astype(jnp.float32)
    d = feats.shape[-1]
    if mask is None:
        if labels is None:
            m = jnp.eye(bsz, dtype=jnp.float32)
        else:
            lab = labels.reshape(-1, 1)
            m = (lab == lab.T).astype(jnp.float32)
    else:
        m = mask.astype(jnp.float32)
    contrast = jnp.swapaxes(feats, 0, 1).reshape(bsz * n_views, d)
    if contrast_mode == 'one':
        anchor, anchor_count = feats[:, 0], 1
    else:
        anchor, anchor_count = contrast, n_views
    anchor = anchor / jnp.maximum(jnp.linalg.norm(anchor, axis=1, keepdims=True), 1e-12)
    contrast_n = contrast / jnp.maximum(jnp.linalg.norm(contrast, axis=1, keepdims=True), 1e-12)
    logits = anchor @ contrast_n.T / temperature
    logits = logits - jnp.max(logits, axis=1, keepdims=True)
    na, nc = logits.shape
    big = jnp.tile(m, (anchor_count, n_views))
    lmask = jnp.ones((na, nc), jnp.float32).at[jnp.arange(na), jnp.arange(na)].set(0.0)
    big = big * lmask
    exp_logits = jnp.exp(logits) * lmask
    log_prob = logits - jnp.log(jnp.sum(exp_logits, axis=1, keepdims=True) + eps)
    msum = jnp.sum(big, axis=1)
    mean_lp = jnp.sum(big * log_prob, axis=1) / jnp.maximum(msum, eps)
    loss_per = -(temperature / base_temperature) * mean_lp
    valid = (msum > eps).astype(jnp.float32)
    nval = jnp.sum(valid)
    return jnp.where(nval > 0.0,
                     jnp.sum(loss_per * valid) / jnp.maximum(nval, 1.0),
                     jnp.float32(0.0))


if __name__ == "__main__":
    key = jax.random.PRNGKey(0)
    k_feat, k_lab = jax.random.split(key)

    bsz, n_views, dim = 8, 2, 32
    features = jax.random.normal(k_feat, (bsz, n_views, dim), dtype=jnp.float32)
    labels = jax.random.randint(k_lab, (bsz,), 0, 4)

    # labels path (positive mask built in-kernel from the label vector)
    loss = jax.block_until_ready(
        supcon_loss(features, labels=labels, temperature=0.07,
                    contrast_mode='all', base_temperature=0.07))
    ref = jax.block_until_ready(
        _supcon_loss_ref(features, labels=labels, temperature=0.07,
                         contrast_mode='all', base_temperature=0.07))
    assert jnp.isfinite(loss), "loss is not finite"
    # bf16 MXU operands (f32 accumulation) -> compare at bf16-appropriate tolerance
    assert jnp.allclose(loss, ref, rtol=2e-2, atol=2e-2), (loss, ref)

    # explicit-mask fallback path must agree with the labels path
    mask = (labels.reshape(-1, 1) == labels.reshape(1, -1)).astype(jnp.float32)
    loss_m = jax.block_until_ready(supcon_loss(features, mask=mask))
    assert jnp.allclose(loss_m, loss, rtol=1e-5, atol=1e-5), (loss_m, loss)

    print("KERNEL_OK")
</pallas_src>

<mosaic_0001>
module attributes {stable_mosaic.version = 11 : i64} {
  func.func @_supcon_tile_kernel(%arg0: i32, %arg1: i32, %arg2: memref<128x1xi32, #tpu.memory_space<vmem>>, %arg3: memref<1x128xi32, #tpu.memory_space<vmem>>, %arg4: memref<128x128xf32, #tpu.memory_space<vmem>>, %arg5: memref<128x128xf32, #tpu.memory_space<vmem>>, %arg6: memref<128x1xf32, #tpu.memory_space<vmem>>, %arg7: memref<128x1xf32, #tpu.memory_space<vmem>>, %arg8: memref<128x1xf32, #tpu.memory_space<vmem>>, %arg9: memref<128x1xf32, #tpu.memory_space<vmem>>, %arg10: memref<128x1xf32, #tpu.memory_space<vmem>>, %arg11: memref<128x1xf32, #tpu.memory_space<vmem>>) attributes {dimension_semantics = [#tpu.dimension_semantics<parallel>, #tpu.dimension_semantics<arbitrary>], iteration_bounds = array<i64: 1, 1>, scalar_prefetch = 0 : i64, scratch_operands = 4 : i64, tpu.core_type = #tpu.core_type<tc>, window_params = [{transform_indices = @transform_0, window_bounds = array<i64: 128, 1>}, {transform_indices = @transform_1, window_bounds = array<i64: 1, 128>}, {transform_indices = @transform_2, window_bounds = array<i64: 128, 128>}, {transform_indices = @transform_3, window_bounds = array<i64: 128, 128>}, {transform_indices = @transform_4, window_bounds = array<i64: 128, 1>}, {transform_indices = @transform_5, window_bounds = array<i64: 128, 1>}]} {
    %c0_i32 = arith.constant 0 : i32
    %0 = arith.cmpi eq, %arg1, %c0_i32 : i32
    %1 = arith.extui %0 : i1 to i32
    %c0_i32_0 = arith.constant 0 : i32
    %2 = arith.cmpi ne, %1, %c0_i32_0 : i32
    scf.if %2 {
      %cst_39 = arith.constant -1.000000e+30 : f32
      %82 = vector.broadcast %cst_39 : f32 to vector<128x1xf32>
      %c0_40 = arith.constant 0 : index
      %c0_41 = arith.constant 0 : index
      %83 = vector.load %arg8[%c0_40, %c0_41] : memref<128x1xf32, #tpu.memory_space<vmem>>, vector<128x1xf32>
      tpu.vector_store %arg8[%c0_40, %c0_41], %82 {strides = array<i32>} : memref<128x1xf32, #tpu.memory_space<vmem>>, vector<128x1xf32>,
      %cst_42 = arith.constant 0.000000e+00 : f32
      %84 = vector.broadcast %cst_42 : f32 to vector<128x1xf32>
      %c0_43 = arith.constant 0 : index
      %c0_44 = arith.constant 0 : index
      %85 = vector.load %arg9[%c0_43, %c0_44] : memref<128x1xf32, #tpu.memory_space<vmem>>, vector<128x1xf32>
      tpu.vector_store %arg9[%c0_43, %c0_44], %84 {strides = array<i32>} : memref<128x1xf32, #tpu.memory_space<vmem>>, vector<128x1xf32>,
      %cst_45 = arith.constant 0.000000e+00 : f32
      %86 = vector.broadcast %cst_45 : f32 to vector<128x1xf32>
      %c0_46 = arith.constant 0 : index
      %c0_47 = arith.constant 0 : index
      %87 = vector.load %arg10[%c0_46, %c0_47] : memref<128x1xf32, #tpu.memory_space<vmem>>, vector<128x1xf32>
      tpu.vector_store %arg10[%c0_46, %c0_47], %86 {strides = array<i32>} : memref<128x1xf32, #tpu.memory_space<vmem>>, vector<128x1xf32>,
      %cst_48 = arith.constant 0.000000e+00 : f32
      %88 = vector.broadcast %cst_48 : f32 to vector<128x1xf32>
      %c0_49 = arith.constant 0 : index
      %c0_50 = arith.constant 0 : index
      %89 = vector.load %arg11[%c0_49, %c0_50] : memref<128x1xf32, #tpu.memory_space<vmem>>, vector<128x1xf32>
      tpu.vector_store %arg11[%c0_49, %c0_50], %88 {strides = array<i32>} : memref<128x1xf32, #tpu.memory_space<vmem>>, vector<128x1xf32>,
    } else {
    }
    %c0 = arith.constant 0 : index
    %c0_1 = arith.constant 0 : index
    %3 = vector.load %arg4[%c0, %c0_1] : memref<128x128xf32, #tpu.memory_space<vmem>>, vector<128x128xf32>
    %c0_2 = arith.constant 0 : index
    %c0_3 = arith.constant 0 : index
    %4 = vector.load %arg5[%c0_2, %c0_3] : memref<128x128xf32, #tpu.memory_space<vmem>>, vector<128x128xf32>
    %5 = arith.mulf %3, %3 : vector<128x128xf32>
    %cst = arith.constant dense<0.000000e+00> : vector<128xf32>
    %6 = vector.multi_reduction <add>, %5, %cst [1] : vector<128x128xf32> to vector<128xf32>
    %7 = vector.shape_cast %6 : vector<128xf32> to vector<128x1xf32>
    %cst_4 = arith.constant 1.000000e-24 : f32
    %8 = vector.broadcast %cst_4 : f32 to vector<128x1xf32>
    %9 = arith.maximumf %7, %8 : vector<128x1xf32>
    %10 = math.rsqrt %9 : vector<128x1xf32>
    %11 = arith.mulf %4, %4 : vector<128x128xf32>
    %cst_5 = arith.constant dense<0.000000e+00> : vector<128xf32>
    %12 = vector.multi_reduction <add>, %11, %cst_5 [1] : vector<128x128xf32> to vector<128xf32>
    %13 = vector.shape_cast %12 : vector<128xf32> to vector<128x1xf32>
    %cst_6 = arith.constant 1.000000e-24 : f32
    %14 = vector.broadcast %cst_6 : f32 to vector<128x1xf32>
    %15 = arith.maximumf %13, %14 : vector<128x1xf32>
    %16 = math.rsqrt %15 : vector<128x1xf32>
    %cst_7 = arith.constant 14.2857141 : f32
    %17 = vector.broadcast %cst_7 : f32 to vector<128x1xf32>
    %18 = arith.mulf %10, %17 : vector<128x1xf32>
    %19 = vector.broadcast %18 : vector<128x1xf32> to vector<128x128xf32>
    %20 = arith.mulf %3, %19 : vector<128x128xf32>
    %21 = arith.truncf %20 : vector<128x128xf32> to vector<128x128xbf16>
    %22 = vector.broadcast %16 : vector<128x1xf32> to vector<128x128xf32>
    %23 = arith.mulf %4, %22 : vector<128x128xf32>
    %24 = arith.truncf %23 : vector<128x128xf32> to vector<128x128xbf16>
    %cst_8 = arith.constant dense<0.000000e+00> : vector<128x128xf32>
    %25 = tpu.matmul %21, %24, %cst_8 {dimension_numbers = #tpu.dot_dimension_numbers<[1], [1], [0], [0], [0, 0, 1, 0], [], []>} : vector<128x128xbf16>, vector<128x128xbf16>, vector<128x128xf32> -> vector<128x128xf32>
    %c128_i32 = arith.constant 128 : i32
    %26 = arith.muli %arg0, %c128_i32 : i32
    %27 = tpu.iota {dimensions = array<i32: 0>} : vector<128x128xi32>
    %28 = vector.broadcast %26 : i32 to vector<128x128xi32>
    %29 = arith.addi %28, %27 : vector<128x128xi32>
    %c128_i32_9 = arith.constant 128 : i32
    %30 = arith.muli %arg1, %c128_i32_9 : i32
    %31 = tpu.iota {dimensions = array<i32: 1>} : vector<128x128xi32>
    %32 = vector.broadcast %30 : i32 to vector<128x128xi32>
    %33 = arith.addi %32, %31 : vector<128x128xi32>
    %c16_i32 = arith.constant 16 : i32
    %34 = vector.broadcast %c16_i32 : i32 to vector<128x128xi32>
    %35 = arith.cmpi slt, %33, %34 : vector<128x128xi32>
    %36 = arith.cmpi ne, %29, %33 : vector<128x128xi32>
    %37 = arith.andi %36, %35 : vector<128x128xi1>
    %cst_10 = arith.constant -1.000000e+30 : f32
    %38 = vector.broadcast %cst_10 : f32 to vector<128x128xf32>
    %39 = arith.select %35, %25, %38 : vector<128x128xi1>, vector<128x128xf32>
    %c0_11 = arith.constant 0 : index
    %c0_12 = arith.constant 0 : index
    %40 = vector.load %arg2[%c0_11, %c0_12] : memref<128x1xi32, #tpu.memory_space<vmem>>, vector<128x1xi32>
    %c0_13 = arith.constant 0 : index
    %c0_14 = arith.constant 0 : index
    %41 = vector.load %arg3[%c0_13, %c0_14] : memref<1x128xi32, #tpu.memory_space<vmem>>, vector<1x128xi32>
    %42 = vector.broadcast %40 : vector<128x1xi32> to vector<128x128xi32>
    %43 = vector.broadcast %41 : vector<1x128xi32> to vector<128x128xi32>
    %44 = arith.cmpi eq, %42, %43 : vector<128x128xi32>
    %45 = arith.andi %44, %37 : vector<128x128xi1>
    %46 = arith.extui %45 : vector<128x128xi1> to vector<128x128xi32>
    %47 = arith.sitofp %46 : vector<128x128xi32> to vector<128x128xf32>
    %cst_15 = arith.constant dense<0xFF800000> : vector<128xf32>
    %48 = vector.multi_reduction <maximumf>, %39, %cst_15 [1] : vector<128x128xf32> to vector<128xf32>
    %49 = vector.shape_cast %48 : vector<128xf32> to vector<128x1xf32>
    %c0_16 = arith.constant 0 : index
    %c0_17 = arith.constant 0 : index
    %50 = vector.load %arg8[%c0_16, %c0_17] : memref<128x1xf32, #tpu.memory_space<vmem>>, vector<128x1xf32>
    %51 = arith.maximumf %50, %49 : vector<128x1xf32>
    %c0_18 = arith.constant 0 : index
    %c0_19 = arith.constant 0 : index
    %52 = vector.load %arg8[%c0_18, %c0_19] : memref<128x1xf32, #tpu.memory_space<vmem>>, vector<128x1xf32>
    %53 = arith.subf %52, %51 : vector<128x1xf32>
    %54 = math.exp %53 : vector<128x1xf32>
    %55 = vector.broadcast %51 : vector<128x1xf32> to vector<128x128xf32>
    %56 = arith.subf %39, %55 : vector<128x128xf32>
    %57 = math.exp %56 : vector<128x128xf32>
    %58 = arith.extui %36 : vector<128x128xi1> to vector<128x128xi32>
    %59 = arith.sitofp %58 : vector<128x128xi32> to vector<128x128xf32>
    %60 = arith.mulf %57, %59 : vector<128x128xf32>
    %c0_20 = arith.constant 0 : index
    %c0_21 = arith.constant 0 : index
    %61 = vector.load %arg9[%c0_20, %c0_21] : memref<128x1xf32, #tpu.memory_space<vmem>>, vector<128x1xf32>
    %62 = arith.mulf %54, %61 : vector<128x1xf32>
    %cst_22 = arith.constant dense<0.000000e+00> : vector<128xf32>
    %63 = vector.multi_reduction <add>, %60, %cst_22 [1] : vector<128x128xf32> to vector<128xf32>
    %64 = vector.shape_cast %63 : vector<128xf32> to vector<128x1xf32>
    %65 = arith.addf %62, %64 : vector<128x1xf32>
    %c0_23 = arith.constant 0 : index
    %c0_24 = arith.constant 0 : index
    %66 = vector.load %arg9[%c0_23, %c0_24] : memref<128x1xf32, #tpu.memory_space<vmem>>, vector<128x1xf32>
    tpu.vector_store %arg9[%c0_23, %c0_24], %65 {strides = array<i32>} : memref<128x1xf32, #tpu.memory_space<vmem>>, vector<128x1xf32>,
    %c0_25 = arith.constant 0 : index
    %c0_26 = arith.constant 0 : index
    %67 = vector.load %arg10[%c0_25, %c0_26] : memref<128x1xf32, #tpu.memory_space<vmem>>, vector<128x1xf32>
    %68 = arith.mulf %47, %39 : vector<128x128xf32>
    %cst_27 = arith.constant dense<0.000000e+00> : vector<128xf32>
    %69 = vector.multi_reduction <add>, %68, %cst_27 [1] : vector<128x128xf32> to vector<128xf32>
    %70 = vector.shape_cast %69 : vector<128xf32> to vector<128x1xf32>
    %71 = arith.addf %67, %70 : vector<128x1xf32>
    %c0_28 = arith.constant 0 : index
    %c0_29 = arith.constant 0 : index
    %72 = vector.load %arg10[%c0_28, %c0_29] : memref<128x1xf32, #tpu.memory_space<vmem>>, vector<128x1xf32>
    tpu.vector_store %arg10[%c0_28, %c0_29], %71 {strides = array<i32>} : memref<128x1xf32, #tpu.memory_space<vmem>>, vector<128x1xf32>,
    %c0_30 = arith.constant 0 : index
    %c0_31 = arith.constant 0 : index
    %73 = vector.load %arg11[%c0_30, %c0_31] : memref<128x1xf32, #tpu.memory_space<vmem>>, vector<128x1xf32>
    %cst_32 = arith.constant dense<0.000000e+00> : vector<128xf32>
    %74 = vector.multi_reduction <add>, %47, %cst_32 [1] : vector<128x128xf32> to vector<128xf32>
    %75 = vector.shape_cast %74 : vector<128xf32> to vector<128x1xf32>
    %76 = arith.addf %73, %75 : vector<128x1xf32>
    %c0_33 = arith.constant 0 : index
    %c0_34 = arith.constant 0 : index
    %77 = vector.load %arg11[%c0_33, %c0_34] : memref<128x1xf32, #tpu.memory_space<vmem>>, vector<128x1xf32>
    tpu.vector_store %arg11[%c0_33, %c0_34], %76 {strides = array<i32>} : memref<128x1xf32, #tpu.memory_space<vmem>>, vector<128x1xf32>,
    %c0_35 = arith.constant 0 : index
    %c0_36 = arith.constant 0 : index
    %78 = vector.load %arg8[%c0_35, %c0_36] : memref<128x1xf32, #tpu.memory_space<vmem>>, vector<128x1xf32>
    tpu.vector_store %arg8[%c0_35, %c0_36], %51 {strides = array<i32>} : memref<128x1xf32, #tpu.memory_space<vmem>>, vector<128x1xf32>,
    %c0_i32_37 = arith.constant 0 : i32
    %79 = arith.cmpi eq, %arg1, %c0_i32_37 : i32
    %80 = arith.extui %79 : i1 to i32
    %c0_i32_38 = arith.constant 0 : i32
    %81 = arith.cmpi ne, %80, %c0_i32_38 : i32
    scf.if %81 {
      %c0_39 = arith.constant 0 : index
      %c0_40 = arith.constant 0 : index
      %82 = vector.load %arg11[%c0_39, %c0_40] : memref<128x1xf32, #tpu.memory_space<vmem>>, vector<128x1xf32>
      %c0_41 = arith.constant 0 : index
      %c0_42 = arith.constant 0 : index
      %83 = vector.load %arg8[%c0_41, %c0_42] : memref<128x1xf32, #tpu.memory_space<vmem>>, vector<128x1xf32>
      %c0_43 = arith.constant 0 : index
      %c0_44 = arith.constant 0 : index
      %84 = vector.load %arg9[%c0_43, %c0_44] : memref<128x1xf32, #tpu.memory_space<vmem>>, vector<128x1xf32>
      %cst_45 = arith.constant 9.99999993E-9 : f32
      %85 = vector.broadcast %cst_45 : f32 to vector<128x1xf32>
      %86 = arith.addf %84, %85 : vector<128x1xf32>
      %87 = math.log %86 : vector<128x1xf32>
      %88 = arith.addf %83, %87 : vector<128x1xf32>
      %cst_46 = arith.constant 9.99999993E-9 : f32
      %89 = vector.broadcast %cst_46 : f32 to vector<128x1xf32>
      %90 = arith.maximumf %82, %89 : vector<128x1xf32>
      %91 = tpu.reciprocal %90 {approx = true} : vector<128x1xf32> -> vector<128x1xf32>
      %c0_47 = arith.constant 0 : index
      %c0_48 = arith.constant 0 : index
      %92 = vector.load %arg10[%c0_47, %c0_48] : memref<128x1xf32, #tpu.memory_space<vmem>>, vector<128x1xf32>
      %93 = arith.mulf %88, %82 : vector<128x1xf32>
      %94 = arith.subf %92, %93 : vector<128x1xf32>
      %95 = arith.mulf %94, %91 : vector<128x1xf32>
      %cst_49 = arith.constant -1.000000e+00 : f32
      %96 = vector.broadcast %cst_49 : f32 to vector<128x1xf32>
      %97 = arith.mulf %96, %95 : vector<128x1xf32>
      %c0_50 = arith.constant 0 : index
      %c0_51 = arith.constant 0 : index
      %98 = vector.load %arg6[%c0_50, %c0_51] : memref<128x1xf32, #tpu.memory_space<vmem>>, vector<128x1xf32>
      tpu.vector_store %arg6[%c0_50, %c0_51], %97 {strides = array<i32>} : memref<128x1xf32, #tpu.memory_space<vmem>>, vector<128x1xf32>,
      %c0_52 = arith.constant 0 : index
      %c0_53 = arith.constant 0 : index
      %99 = vector.load %arg7[%c0_52, %c0_53] : memref<128x1xf32, #tpu.memory_space<vmem>>, vector<128x1xf32>
      tpu.vector_store %arg7[%c0_52, %c0_53], %82 {strides = array<i32>} : memref<128x1xf32, #tpu.memory_space<vmem>>, vector<128x1xf32>,
    } else {
    }
    return
  }
  func.func @transform_0(%arg0: i32, %arg1: i32) -> (i32, i32) {
    %c0_i32 = arith.constant 0 : i32
    %c0_i32_0 = arith.constant 0 : i32
    return %arg0, %c0_i32 : i32, i32
  }
  func.func @transform_1(%arg0: i32, %arg1: i32) -> (i32, i32) {
    %c0_i32 = arith.constant 0 : i32
    %c0_i32_0 = arith.constant 0 : i32
    return %c0_i32, %arg1 : i32, i32
  }
  func.func @transform_2(%arg0: i32, %arg1: i32) -> (i32, i32) {
    %c0_i32 = arith.constant 0 : i32
    %c0_i32_0 = arith.constant 0 : i32
    return %arg0, %c0_i32 : i32, i32
  }
  func.func @transform_3(%arg0: i32, %arg1: i32) -> (i32, i32) {
    %c0_i32 = arith.constant 0 : i32
    %c0_i32_0 = arith.constant 0 : i32
    return %arg1, %c0_i32 : i32, i32
  }
  func.func @transform_4(%arg0: i32, %arg1: i32) -> (i32, i32) {
    %c0_i32 = arith.constant 0 : i32
    %c0_i32_0 = arith.constant 0 : i32
    return %arg0, %c0_i32 : i32, i32
  }
  func.func @transform_5(%arg0: i32, %arg1: i32) -> (i32, i32) {
    %c0_i32 = arith.constant 0 : i32
    %c0_i32_0 = arith.constant 0 : i32
    return %arg0, %c0_i32 : i32, i32
  }
}

</mosaic_0001>

<bundles_post_ra>
// kernel: tpu_custom_call.1
= control target key start
LH: loop header
LB: loop body
LE: loop exit
PB: predicated region body
PF: predicated region fallthrough
CT: control target
= control target key end

     0   :  { %11 = vsyncpa [#allocation7], 0  ;;  %s2052_s21 = smov [#allocation6]   ;;  %s2053_s23 = smov 128   ;;  %s3986_s0 = inlined_call_operand.vmem [shape: s32[128,1], index: 0, kind: input, shape index: {}]   ;;  %s3987_s1 = inlined_call_operand.vmem [shape: s32[1,128], index: 1, kind: input, shape index: {}]   ;;  %s3988_s2 = inlined_call_operand.vmem [shape: f32[128,128], index: 2, kind: input, shape index: {}]   ;;  %s3989_s3 = inlined_call_operand.hbm [shape: f32[128,128], index: 3, kind: input, shape index: {}]   ;;  %s3990_s4 = inlined_call_operand.vmem [shape: f32[128,1], index: 4, kind: output, shape index: {0}]   ;;  %s3991_s5 = inlined_call_operand.vmem [shape: f32[128,1], index: 5, kind: output, shape index: {1}]  }
   0x1   :  { %s22_s20 = sshll.u32 %s3989_s3, 4  ;;  %s24_s22 = sshll.u32 %s2052_s21, 4  ;;  %s23_s20 = int_to_ptr.hbm [resolvable:$true] %s22_s20  ;;  %s25_s22 = int_to_ptr.vmem [resolvable:$true] %s24_s22 }
   0x2   :  { %s2054_s24 = smov 8  }
   0x3   :  { %30 = dma.hbm_to_vmem [thread:$0]  %s23_s20, 2048, %s25_s22, [#allocation7], %s2053_s23, %s2053_s23, %s2054_s24  }
   0x4   :  { %2050 = dma.done.wait [#allocation7], 2048  }
   0x5   :  { %2051 = vsyncadd [#allocation7], 4294965248  ;;  %v2094_v0 = vld [vmem:[%s3988_s2 + $0x20] sm:$0xff]  ;;  %v2099_v1 = vld [vmem:[%s3988_s2 + $0x10] sm:$0xff] }
   0x6   :  { %v2104_v2 = vld [vmem:[%s3988_s2] sm:$0xff]  ;;  %v140_v3 = vmul.f32 %v2094_v0, %v2094_v0  ;;  %v138_v4 = vmul.f32 %v2099_v1, %v2099_v1  ;;  %v2115_v6 = vld [vmem:[%s3988_s2 + $0x28] sm:$0xff]  ;;  %v2120_v7 = vld [vmem:[%s3988_s2 + $0x18] sm:$0xff] }
   0x7   :  { %v136_v5 = vmul.f32 %v2104_v2, %v2104_v2  ;;  %v2125_v8 = vld [vmem:[%s3988_s2 + $0x8] sm:$0xff]  ;;  %v141_v9 = vmul.f32 %v2115_v6, %v2115_v6  ;;  %v139_v10 = vmul.f32 %v2120_v7, %v2120_v7  ;;  %v2136_v12 = vld [vmem:[%s3988_s2 + $0x40] sm:$0xff]  ;;  %v2141_v13 = vld [vmem:[%s3988_s2 + $0x38] sm:$0xff] }
   0x8   :  { %160 = vadd.xlane.f32.xlu2 %v140_v3  ;;  %156 = vadd.xlane.f32.xlu1 %v138_v4  ;;  %v137_v11 = vmul.f32 %v2125_v8, %v2125_v8  ;;  %v2146_v14 = vld [vmem:[%s3988_s2 + $0x30] sm:$0xff]  ;;  %v144_v15 = vmul.f32 %v2136_v12, %v2136_v12  ;;  %v143_v16 = vmul.f32 %v2141_v13, %v2141_v13  ;;  %v2157_v18 = vld [vmem:[%s3988_s2 + $0x58] sm:$0xff]  ;;  %v2167_v20 = vld [vmem:[%s3988_s2 + $0x48] sm:$0xff] }
   0x9   :  { %152 = vadd.xlane.f32.xlu0 %v136_v5  ;;  %v142_v17 = vmul.f32 %v2146_v14, %v2146_v14  ;;  %4065 = vst [vmem:[#allocation9_spill] sm:$0xff] %v2157_v18  ;;  %v2162_v19 = vld [vmem:[%s3988_s2 + $0x50] sm:$0xff]  ;;  %v147_v21 = vmul.f32 %v2157_v18, %v2157_v18  ;;  %v145_v23 = vmul.f32 %v2167_v20, %v2167_v20  ;;  %v2183_v25 = vld [vmem:[%s3988_s2 + $0x68] sm:$0xff]  ;;  %v2188_v26 = vld [vmem:[%s3988_s2 + $0x60] sm:$0xff] }
   0xa   :  { %4066 = vst [vmem:[#allocation10_spill] sm:$0xff] %v2162_v19  ;;  %v146_v22 = vmul.f32 %v2162_v19, %v2162_v19  ;;  %v2178_v24 = vld [vmem:[%s3988_s2 + $0x70] sm:$0xff]  ;;  %v149_v28 = vmul.f32 %v2183_v25, %v2183_v25  ;;  %v148_v29 = vmul.f32 %v2188_v26, %v2188_v26  ;;  %v2196_v30 = vld [vmem:[#allocation6 + $0x8] sm:$0xff]  ;;  %v2198_v31 = vld [vmem:[#allocation6] sm:$0xff] }
   0xb   :  { %4067 = vst [vmem:[#allocation11_spill] sm:$0xff] %v2178_v24  ;;  %v150_v27 = vmul.f32 %v2178_v24, %v2178_v24  ;;  %v2203_v32 = vld [vmem:[%s3988_s2 + $0x78] sm:$0xff]  ;;  %v361_v33 = vmul.f32 %v2196_v30, %v2196_v30  ;;  %v360_v34 = vmul.f32 %v2198_v31, %v2198_v31  ;;  %v124_v36 = vld [vmem:[#allocation6 + $0x20] sm:$0xff]  ;;  %v122_v38 = vld [vmem:[#allocation6 + $0x10] sm:$0xff] }
   0xc   :  { %4068 = vst [vmem:[#allocation12_spill] sm:$0xff] %v2203_v32  ;;  %v151_v35 = vmul.f32 %v2203_v32, %v2203_v32  ;;  %v123_v37 = vld [vmem:[#allocation6 + $0x18] sm:$0xff]  ;;  %v364_v39 = vmul.f32 %v124_v36, %v124_v36  ;;  %v362_v41 = vmul.f32 %v122_v38, %v122_v38  ;;  %v2211_v42 = vld [vmem:[#allocation6 + $0x70] sm:$0xff]  ;;  %v125_v44 = vld [vmem:[#allocation6 + $0x28] sm:$0xff] }
   0xd   :  { %v363_v40 = vmul.f32 %v123_v37, %v123_v37  ;;  %v126_v43 = vld [vmem:[#allocation6 + $0x30] sm:$0xff]  ;;  %v374_v45 = vmul.f32 %v2211_v42, %v2211_v42  ;;  %v365_v47 = vmul.f32 %v125_v44, %v125_v44  ;;  %v2215_v48 = vld [vmem:[#allocation6 + $0x60] sm:$0xff]  ;;  %v127_v49 = vld [vmem:[#allocation6 + $0x38] sm:$0xff] }
   0xe   :  { %v366_v46 = vmul.f32 %v126_v43, %v126_v43  ;;  %v2217_v50 = vld [vmem:[#allocation6 + $0x78] sm:$0xff]  ;;  %v372_v51 = vmul.f32 %v2215_v48, %v2215_v48  ;;  %v367_v52 = vmul.f32 %v127_v49, %v127_v49  ;;  %v2223_v54 = vld [vmem:[#allocation6 + $0x50] sm:$0xff]  ;;  %v2225_v55 = vld [vmem:[#allocation6 + $0x40] sm:$0xff] }
   0xf   :  { %v375_v53 = vmul.f32 %v2217_v50, %v2217_v50  ;;  %4069 = vst [vmem:[#allocation13_spill] sm:$0xff] %v2223_v54  ;;  %v2227_v56 = vld [vmem:[#allocation6 + $0x68] sm:$0xff]  ;;  %v370_v57 = vmul.f32 %v2223_v54, %v2223_v54  ;;  %v368_v58 = vmul.f32 %v2225_v55, %v2225_v55  ;;  %v2237_v61 = vld [vmem:[#allocation6 + $0x58] sm:$0xff] }
  0x10   :  { %162 = vadd.xlane.f32.xlu2 %v141_v9  ;;  %158 = vadd.xlane.f32.xlu1 %v139_v10  ;;  %4070 = vst [vmem:[#allocation14_spill] sm:$0xff] %v2225_v55  ;;  %v373_v59 = vmul.f32 %v2227_v56, %v2227_v56  ;;  %v2235_v60 = vld [vmem:[#allocation6 + $0x48] sm:$0xff]  ;;  %v371_v63 = vmul.f32 %v2237_v61, %v2237_v61 }
  0x11   :  { %154 = vadd.xlane.f32.xlu0 %v137_v11  ;;  %4071 = vst [vmem:[#allocation15_spill] sm:$0xff] %v2227_v56  ;;  %v369_v62 = vmul.f32 %v2235_v60, %v2235_v60 }
  0x12   :  { %4072 = vst [vmem:[#allocation16_spill] sm:$0xff] %v2235_v60 }
  0x13   :  { %4073 = vst [vmem:[#allocation17_spill] sm:$0xff] %v2237_v61 }
  0x18   :  { %168 = vadd.xlane.f32.xlu2 %v144_v15  ;;  %166 = vadd.xlane.f32.xlu1 %v143_v16 }
  0x19   :  { %164 = vadd.xlane.f32.xlu0 %v142_v17 }
  0x20   :  { %174 = vadd.xlane.f32.xlu2 %v147_v21  ;;  %172 = vadd.xlane.f32.xlu1 %v146_v22 }
  0x21   :  { %170 = vadd.xlane.f32.xlu0 %v145_v23 }
  0x28   :  { %180 = vadd.xlane.f32.xlu2 %v150_v27  ;;  %178 = vadd.xlane.f32.xlu1 %v149_v28 }
  0x29   :  { %176 = vadd.xlane.f32.xlu0 %v148_v29 }
  0x30   :  { %378 = vadd.xlane.f32.xlu2 %v361_v33  ;;  %376 = vadd.xlane.f32.xlu1 %v360_v34 }
  0x31   :  { %182 = vadd.xlane.f32.xlu0 %v151_v35 }
  0x38   :  { %384 = vadd.xlane.f32.xlu2 %v364_v39  ;;  %382 = vadd.xlane.f32.xlu1 %v363_v40 }
  0x39   :  { %380 = vadd.xlane.f32.xlu0 %v362_v41 }
  0x40   :  { %404 = vadd.xlane.f32.xlu2 %v374_v45  ;;  %388 = vadd.xlane.f32.xlu1 %v366_v46 }
  0x41   :  { %386 = vadd.xlane.f32.xlu0 %v365_v47 }
  0x48   :  { %400 = vadd.xlane.f32.xlu2 %v372_v51  ;;  %390 = vadd.xlane.f32.xlu1 %v367_v52 }
  0x49   :  { %406 = vadd.xlane.f32.xlu0 %v375_v53 }
  0x50   :  { %396 = vadd.xlane.f32.xlu2 %v370_v57  ;;  %392 = vadd.xlane.f32.xlu1 %v368_v58 }
  0x51   :  { %402 = vadd.xlane.f32.xlu0 %v373_v59 }
  0x58   :  { %394 = vadd.xlane.f32.xlu1 %v369_v62 }
  0x59   :  { %398 = vadd.xlane.f32.xlu0 %v371_v63 }
  0x7b   :  { %v161_v3 = vpop.xlane.xlu2 %160  ;;  %v2243_v4 = vpop.xlane.xlu1 %156 }
  0x7c   :  { %v188_v5 = vmax.f32 %v161_v3, 1e-24  ;;  %v153_v9 = vpop.xlane.xlu0 %152 }
  0x7d   :  { %v184_v10 = vmax.f32 %v153_v9, 1e-24 }
  0x7e   :  { %1827 = vrsqrt.f32 %v188_v5  ;;  %vm246_vm5 = vweird.f32 %v188_v5 }
  0x7f   :  { %1829 = vrsqrt.f32 %v184_v10  ;;  %vm206_vm1 = vweird.f32 %v184_v10 }
  0x83   :  { %v163_v11 = vpop.xlane.xlu2 %162  ;;  %v2245_v15 = vpop.xlane.xlu1 %158 }
  0x84   :  { %v2247_v16 = vpop.eup %1827  ;;  %v189_v17 = vmax.f32 %v163_v11, 1e-24  ;;  %v155_v21 = vpop.xlane.xlu0 %154 }
  0x85   :  { %v185_v22 = vmax.f32 %v155_v21, 1e-24  ;;  %v1830_v23 = vpop.eup %1829  ;;  %v241_v27 = vmul.f32 %v2247_v16, %v188_v5  ;;  %vm247_vm6 = vweird.f32 %v2247_v16 }
  0x86   :  { %1831 = vrsqrt.f32 %v189_v17  ;;  %v201_v28 = vmul.f32 %v1830_v23, %v184_v10  ;;  %vm207_vm0 = vweird.f32 %v1830_v23  ;;  %vm256_vm2 = vweird.f32 %v189_v17  ;;  %vm248_vm11 = vmor %vm246_vm5, %vm247_vm6 }
  0x87   :  { %1833 = vrsqrt.f32 %v185_v22  ;;  %v242_v33 = vmul.f32 %v2247_v16, %v241_v27  ;;  %vm2265_vm7 = vmor %vm206_vm1, %vm207_vm0  ;;  %vm216_vm9 = vweird.f32 %v185_v22 }
  0x88   :  { %v202_v29 = vmul.f32 %v1830_v23, %v201_v28 }
  0x89   :  { %v243_v43 = vmul.f32 0.5, %v242_v33 }
  0x8a   :  { %v203_v37 = vmul.f32 0.5, %v202_v29 }
  0x8b   :  { %v169_v34 = vpop.xlane.xlu2 %168  ;;  %v167_v35 = vpop.xlane.xlu1 %166  ;;  %v244_v51 = vsub.f32 1.5, %v243_v43 }
  0x8c   :  { %v1832_v36 = vpop.eup %1831  ;;  %v2251_v38 = vmax.f32 %v169_v34, 1e-24  ;;  %v165_v39 = vpop.xlane.xlu0 %164  ;;  %v204_v46 = vsub.f32 1.5, %v203_v37 }
  0x8d   :  { %v251_v40 = vmul.f32 %v1832_v36, %v189_v17  ;;  %v1834_v41 = vpop.eup %1833  ;;  %vm257_vm3 = vweird.f32 %v1832_v36  ;;  %v245_v21 = vmul.f32 %v2247_v16, %v244_v51 }
  0x8e   :  { %1835 = vrsqrt.f32 %v2251_v38  ;;  %v211_v45 = vmul.f32 %v1834_v41, %v185_v22  ;;  %v205_v62 = vmul.f32 %v1830_v23, %v204_v46  ;;  %vm217_vm4 = vweird.f32 %v1834_v41  ;;  %vm258_vm8 = vmor %vm256_vm2, %vm257_vm3 }
  0x8f   :  { %v252_v44 = vmul.f32 %v1832_v36, %v251_v40  ;;  %vm218_vm10 = vmor %vm216_vm9, %vm217_vm4  ;;  %v249_v34 = vsel %vm248_vm11, %v2247_v16, %v245_v21  ;;  %vm286_vm12 = vweird.f32 %v2251_v38 }
  0x90   :  { %v212_v49 = vmul.f32 %v1834_v41, %v211_v45  ;;  %v209_v33 = vsel %vm2265_vm7, %v1830_v23, %v205_v62  ;;  %v2281_v23 = vmax.f32 %v2245_v15, 1e-24 }
  0x91   :  { %v253_v47 = vmul.f32 0.5, %v252_v44  ;;  %v2274_v44 = vmax.f32 %v2243_v4, 1e-24  ;;  %v584_v45 = vmul.f32 14.285714, %v209_v33 }
  0x92   :  { %v213_v53 = vmul.f32 0.5, %v212_v49  ;;  %vm236_vm11 = vweird.f32 %v2281_v23 }
  0x93   :  { %v254_v52 = vsub.f32 1.5, %v253_v47  ;;  %v2254_v57 = vpop.xlane.xlu2 %174  ;;  %v2256_v58 = vpop.xlane.xlu1 %172  ;;  %v588_v47 = vmul.f32 14.285714, %v249_v34  ;;  %v2284_v16 = vmul.f32 %v584_v45, %v2104_v2  ;;  %vm226_vm7 = vweird.f32 %v2274_v44 }
  0x94   :  { %v2258_v59 = vpop.eup %1835  ;;  %v171_v63 = vpop.xlane.xlu0 %170  ;;  %v214_v9 = vsub.f32 1.5, %v213_v53  ;;  %v2337_v45 = vmax.f32 %v2256_v58, 1e-24 }
  0x95   :  { %v255_v3 = vmul.f32 %v1832_v36, %v254_v52  ;;  %v281_v11 = vmul.f32 %v2258_v59, %v2251_v38  ;;  %v193_v17 = vmax.f32 %v171_v63, 1e-24  ;;  %4077 = vst [vmem:[#allocation19_spill] sm:$0xff] %v2284_v16  ;;  %v2289_v52 = vmax.f32 %v167_v35, 1e-24 }
  0x96   :  { %v215_v10 = vmul.f32 %v1834_v41, %v214_v9  ;;  %v2292_v62 = vmul.f32 %v588_v47, %v2094_v0  ;;  %v2296_v63 = vmax.f32 %v165_v39, 1e-24  ;;  %vm287_vm13 = vweird.f32 %v2258_v59 }
  0x97   :  { %v259_v28 = vsel %vm258_vm8, %v1832_v36, %v255_v3  ;;  %v282_v29 = vmul.f32 %v2258_v59, %v281_v11  ;;  %1837 = vrsqrt.f32 %v193_v17  ;;  %vm2315_vm15 = vmor %vm286_vm12, %vm287_vm13  ;;  %vm296_vm0 = vweird.f32 %v193_v17 }
  0x98   :  { %v219_v5 = vsel %vm218_vm10, %v1834_v41, %v215_v10  ;;  %v589_v43 = vmul.f32 14.285714, %v259_v28  ;;  %1839 = vrsqrt.f32 %v2274_v44  ;;  %4079 = vst [vmem:[#allocation21_spill] sm:$0xff] %v2292_v62 }
  0x99   :  { %v585_v46 = vmul.f32 14.285714, %v219_v5  ;;  %v283_v36 = vmul.f32 0.5, %v282_v29  ;;  %1841 = vrsqrt.f32 %v2281_v23 }
  0x9a   :  { %v2277_v49 = vmul.f32 %v589_v43, %v2115_v6  ;;  %1843 = vrsqrt.f32 %v2289_v52  ;;  %v2332_v43 = vmax.f32 %v2254_v57, 1e-24 }
  0x9b   :  { %v181_v37 = vpop.xlane.xlu2 %180  ;;  %v179_v40 = vpop.xlane.xlu1 %178  ;;  %v2287_v4 = vmul.f32 %v585_v46, %v2125_v8  ;;  %v284_v41 = vsub.f32 1.5, %v283_v36 }
  0x9c   :  { %v177_v22 = vpop.xlane.xlu0 %176  ;;  %4076 = vst [vmem:[#allocation18_spill] sm:$0xff] %v2277_v49  ;;  %v2319_v10 = vmax.f32 %v179_v40, 1e-24  ;;  %v2345_v36 = vmax.f32 %v181_v37, 1e-24 }
  0x9d   :  { %v1838_v51 = vpop.eup %1837  ;;  %4078 = vst [vmem:[#allocation20_spill] sm:$0xff] %v2287_v4  ;;  %v285_v11 = vmul.f32 %v2258_v59, %v284_v41  ;;  %v2322_v29 = vmax.f32 %v177_v22, 1e-24 }
  0x9e   :  { %v291_v53 = vmul.f32 %v1838_v51, %v193_v17  ;;  %v2311_v21 = vpop.eup %1839  ;;  %vm297_vm14 = vweird.f32 %v1838_v51  ;;  %vm336_vm13 = vweird.f32 %v2319_v10 }
  0x9f   :  { %v289_v33 = vsel %vm2315_vm15, %v2258_v59, %v285_v11  ;;  %v2327_v5 = vpop.eup %1841  ;;  %v221_v34 = vmul.f32 %v2311_v21, %v2274_v44  ;;  %vm298_vm1 = vmor %vm296_vm0, %vm297_vm14  ;;  %vm227_vm9 = vweird.f32 %v2311_v21 }
  0xa0   :  { %v292_v15 = vmul.f32 %v1838_v51, %v291_v53  ;;  %v2334_v40 = vpop.eup %1843  ;;  %v592_v57 = vmul.f32 14.285714, %v289_v33  ;;  %v231_v37 = vmul.f32 %v2327_v5, %v2281_v23  ;;  %vm2471_vm10 = vmor %vm226_vm7, %vm227_vm9  ;;  %vm237_vm12 = vweird.f32 %v2327_v5 }
  0xa1   :  { %v271_v11 = vmul.f32 %v2334_v40, %v2289_v52  ;;  %vm2527_vm0 = vmor %vm236_vm11, %vm237_vm12 }
  0xa2   :  { %v293_v39 = vmul.f32 0.5, %v292_v15  ;;  %v232_v62 = vmul.f32 %v2327_v5, %v231_v37 }
  0xa3   :  { %v379_v3 = vpop.xlane.xlu2 %378  ;;  %v377_v9 = vpop.xlane.xlu1 %376 }
  0xa4   :  { %v2302_v8 = vmax.f32 %v379_v3, 1e-24  ;;  %v2304_v35 = vmax.f32 %v377_v9, 1e-24  ;;  %v2306_v0 = vpop.xlane.xlu0 %182  ;;  %v294_v38 = vsub.f32 1.5, %v293_v39  ;;  %v2369_v39 = vmul.f32 %v592_v57, %v2136_v12 }
  0xa5   :  { %v233_v4 = vmul.f32 0.5, %v232_v62  ;;  %v787_v62 = vld [vmem:[%s3986_s0 + $0x8] sm:$0xff] }
  0xa6   :  { %1845 = vrsqrt.f32 %v2302_v8  ;;  %v295_v28 = vmul.f32 %v1838_v51, %v294_v38  ;;  %4082 = vst [vmem:[#allocation22_spill] sm:$0xff] %v2369_v39  ;;  %vm440_vm2 = vweird.f32 %v2302_v8  ;;  %vm430_vm4 = vweird.f32 %v2304_v35 }
  0xa7   :  { %1847 = vrsqrt.f32 %v2296_v63  ;;  %v234_v32 = vsub.f32 1.5, %v233_v4 }
  0xa8   :  { %1849 = vrsqrt.f32 %v2304_v35  ;;  %v299_v46 = vsel %vm298_vm1, %v1838_v51, %v295_v28  ;;  %v222_v51 = vmul.f32 %v2311_v21, %v221_v34  ;;  %vm326_vm1 = vweird.f32 %v2322_v29 }
  0xa9   :  { %1851 = vrsqrt.f32 %v2319_v10  ;;  %v593_v41 = vmul.f32 14.285714, %v299_v46  ;;  %v2479_v4 = vmul.f32 %v2327_v5, %v234_v32 }
  0xaa   :  { %1853 = vrsqrt.f32 %v2322_v29 }
  0xab   :  { %v2339_v17 = vpop.xlane.xlu2 %384  ;;  %v2341_v22 = vpop.xlane.xlu1 %382  ;;  %1855 = vrsqrt.f32 %v2332_v43  ;;  %v2372_v38 = vmul.f32 %v593_v41, %v2167_v20  ;;  %v223_v41 = vmul.f32 0.5, %v222_v51 }
  0xac   :  { %v2343_v59 = vpop.eup %1845  ;;  %v2348_v47 = vpop.xlane.xlu0 %380  ;;  %1857 = vrsqrt.f32 %v2337_v45 }
  0xad   :  { %v2350_v53 = vpop.eup %1847  ;;  %v435_v58 = vmul.f32 %v2343_v59, %v2302_v8  ;;  %1859 = vrsqrt.f32 %v2345_v36  ;;  %4083 = vst [vmem:[#allocation23_spill] sm:$0xff] %v2372_v38  ;;  %vm441_vm3 = vweird.f32 %v2343_v59  ;;  %v224_v38 = vsub.f32 1.5, %v223_v41 }
  0xae   :  { %v2355_v15 = vpop.eup %1849  ;;  %v261_v27 = vmul.f32 %v2350_v53, %v2296_v63  ;;  %vm2421_vm6 = vmor %vm440_vm2, %vm441_vm3 }
  0xaf   :  { %v436_v3 = vmul.f32 %v2343_v59, %v435_v58  ;;  %v425_v9 = vmul.f32 %v2355_v15, %v2304_v35  ;;  %v2377_v34 = vpop.eup %1851  ;;  %vm431_vm5 = vweird.f32 %v2355_v15  ;;  %v786_v35 = vld [vmem:[%s3986_s0] sm:$0xff]  ;;  %v2459_v61 = vmul.f32 %v2311_v21, %v224_v38 }
  0xb0   :  { %v2381_v58 = vpop.eup %1853  ;;  %v262_v46 = vmul.f32 %v2350_v53, %v261_v27  ;;  %v2410_v27 = vmax.f32 %v2306_v0, 1e-24  ;;  %vm2429_vm8 = vmor %vm430_vm4, %vm431_vm5  ;;  %vm337_vm14 = vweird.f32 %v2377_v34  ;;  %vm267_vm4 = vweird.f32 %v2350_v53 }
  0xb1   :  { %v437_v28 = vmul.f32 0.5, %v436_v3  ;;  %v426_v33 = vmul.f32 %v2355_v15, %v425_v9  ;;  %v2385_v20 = vpop.eup %1855  ;;  %v272_v3 = vmul.f32 %v2334_v40, %v271_v11  ;;  %v321_v51 = vmul.f32 %v2381_v58, %v2322_v29  ;;  %vm2540_vm2 = vmor %vm336_vm13, %vm337_vm14 }
  0xb2   :  { %v2393_v16 = vpop.eup %1857  ;;  %v263_v60 = vmul.f32 0.5, %v262_v46  ;;  %vm327_vm15 = vweird.f32 %v2381_v58  ;;  %vm276_vm5 = vweird.f32 %v2289_v52  ;;  %vm317_vm12 = vweird.f32 %v2385_v20  ;;  %v799_v52 = vld [vmem:[%s3986_s0 + $0x68] sm:$0xff] }
  0xb3   :  { %v438_v2 = vsub.f32 1.5, %v437_v28  ;;  %v427_v6 = vmul.f32 0.5, %v426_v33  ;;  %v405_v12 = vpop.xlane.xlu2 %404  ;;  %v2383_v57 = vpop.xlane.xlu1 %388  ;;  %v331_v28 = vmul.f32 %v2377_v34, %v2319_v10  ;;  %v273_v0 = vmul.f32 0.5, %v272_v3  ;;  %vm2561_vm3 = vmor %vm326_vm1, %vm327_vm15 }
  0xb4   :  { %v2389_v9 = vmax.f32 %v405_v12, 1e-24  ;;  %v2391_v49 = vpop.xlane.xlu0 %386  ;;  %v2399_v39 = vpop.eup %1859  ;;  %v301_v12 = vmul.f32 %v2393_v16, %v2337_v45  ;;  %v322_v54 = vmul.f32 %v2381_v58, %v321_v51  ;;  %v264_v56 = vsub.f32 1.5, %v263_v60 }
  0xb5   :  { %v428_v33 = vsub.f32 1.5, %v427_v6  ;;  %v439_v37 = vmul.f32 %v2343_v59, %v438_v2  ;;  %v311_v6 = vmul.f32 %v2385_v20, %v2332_v43  ;;  %v341_v55 = vmul.f32 %v2399_v39, %v2345_v36 }
  0xb6   :  { %1861 = vrsqrt.f32 %v2389_v9  ;;  %v332_v2 = vmul.f32 %v2377_v34, %v331_v28  ;;  %v788_v28 = vld [vmem:[%s3986_s0 + $0x10] sm:$0xff]  ;;  %v274_v19 = vsub.f32 1.5, %v273_v0  ;;  %v2494_v32 = vmul.f32 %v2350_v53, %v264_v56 }
  0xb7   :  { %v429_v11 = vmul.f32 %v2355_v15, %v428_v33  ;;  %v443_v8 = vsel %vm2421_vm6, %v2343_v59, %v439_v37  ;;  %1863 = vrsqrt.f32 %v2410_v27  ;;  %v312_v59 = vmul.f32 %v2385_v20, %v311_v6 }
  0xb8   :  { %v2055_v33 = vmov 0   ;;  %v342_v24 = vmul.f32 %v2399_v39, %v341_v55  ;;  %v333_v18 = vmul.f32 0.5, %v332_v2  ;;  %v323_v6 = vmul.f32 0.5, %v322_v54 }
  0xb9   :  { %v433_v41 = vsel %vm2429_vm8, %v2355_v15, %v429_v11  ;;  %v302_v15 = vmul.f32 %v2393_v16, %v301_v12  ;;  %1825 = vset.pattern.permute.xlu1 %v2055_v33  ;;  %1824 = vset.pattern.permute.xlu0 %v2055_v33  ;;  %v625_v12 = vmul.f32 %v443_v8, %v2196_v30  ;;  %v313_v30 = vmul.f32 0.5, %v312_v59 }
  0xba   :  { %1823 = vset.pattern.permute.xlu2 %v2055_v33  ;;  %810 = vperm.xlu1 %1825, %v788_v28   ;;  %v343_v60 = vmul.f32 0.5, %v342_v24  ;;  %v334_v2 = vsub.f32 1.5, %v333_v18  ;;  %v324_v0 = vsub.f32 1.5, %v323_v6  ;;  %v789_v18 = vld [vmem:[%s3986_s0 + $0x18] sm:$0xff]  ;;  %vm277_vm6 = vweird.f32 %v2334_v40 }
  0xbb   :  { %v401_v3 = vpop.xlane.xlu2 %400  ;;  %v2440_v46 = vpop.xlane.xlu1 %390  ;;  %804 = vperm.xlu2 %1823, %v786_v35   ;;  %807 = vperm.xlu0 %1824, %v787_v62   ;;  %v2491_v35 = vmul.f32 %v2334_v40, %v274_v19  ;;  %v314_v19 = vsub.f32 1.5, %v313_v30  ;;  %v2516_v30 = vmax.f32 %v2339_v17, 1e-24  ;;  %v2533_v17 = vmax.f32 %v2383_v57, 1e-24 }
  0xbc   :  { %v2448_v51 = vpop.eup %1861  ;;  %v2453_v37 = vmax.f32 %v401_v3, 1e-24  ;;  %v407_v11 = vpop.xlane.xlu0 %406  ;;  %v624_v3 = vmul.f32 %v433_v41, %v2198_v31  ;;  %v303_v31 = vmul.f32 0.5, %v302_v15  ;;  %v791_v15 = vld [vmem:[%s3986_s0 + $0x28] sm:$0xff]  ;;  %v344_v6 = vsub.f32 1.5, %v343_v60  ;;  %v794_v60 = vld [vmem:[%s3986_s0 + $0x40] sm:$0xff] }
  0xbd   :  { %v565_v38 = vmul.f32 %v2448_v51, %v2389_v9  ;;  %v2476_v54 = vpop.eup %1863  ;;  %v2486_v8 = vmax.f32 %v407_v11, 1e-24  ;;  %4091 = vst [vmem:[#allocation25_spill] sm:$0xff] %v2516_v30  ;;  %v2554_v57 = vmul.f32 %v2385_v20, %v314_v19  ;;  %v793_v19 = vld [vmem:[%s3986_s0 + $0x38] sm:$0xff]  ;;  %vm570_vm7 = vweird.f32 %v2389_v9 }
  0xbe   :  { %1865 = vrsqrt.f32 %v2453_v37  ;;  %v2488_v41 = vpack.c.bf16 %v625_v12, %v624_v3  ;;  %v304_v33 = vsub.f32 1.5, %v303_v31  ;;  %v351_v56 = vmul.f32 %v2476_v54, %v2410_v27 }
  0xbf   :  { %v566_v24 = vmul.f32 %v2448_v51, %v565_v38  ;;  %1867 = vrsqrt.f32 %v2486_v8  ;;  %v335_v3 = vmul.f32 %v2377_v34, %v334_v2  ;;  %v325_v38 = vmul.f32 %v2381_v58, %v324_v0 }
  0xc0   :  { %4090 = vst [vmem:[#allocation24_spill] sm:$0xff] %v2488_v41  ;;  %v352_v23 = vmul.f32 %v2476_v54, %v351_v56  ;;  %v2557_v10 = vmul.f32 %v2393_v16, %v304_v33  ;;  %v790_v41 = vld [vmem:[%s3986_s0 + $0x20] sm:$0xff]  ;;  %vm266_vm8 = vweird.f32 %v2296_v63  ;;  %vm571_vm9 = vweird.f32 %v2448_v51 }
  0xc1   :  { %v567_v2 = vmul.f32 0.5, %v566_v24  ;;  %v329_v33 = vsel %vm2561_vm3, %v2381_v58, %v325_v38  ;;  %vm550_vm15 = vweird.f32 %v2453_v37  ;;  %vm347_vm3 = vweird.f32 %v2399_v39  ;;  %vm2643_vm13 = vmor %vm570_vm7, %vm571_vm9 }
  0xc2   :  { %819 = vperm.xlu1 %1825, %v791_v15   ;;  %vm580_vm11 = vweird.f32 %v2486_v8  ;;  %vm357_vm9 = vweird.f32 %v2476_v54 }
  0xc3   :  { %v397_v28 = vpop.xlane.xlu2 %396  ;;  %v393_v59 = vpop.xlane.xlu1 %392  ;;  %813 = vperm.xlu2 %1823, %v789_v18   ;;  %828 = vperm.xlu0 %1824, %v794_v60   ;;  %v2546_v18 = vmax.f32 %v2440_v46, 1e-24  ;;  %v2566_v46 = vmax.f32 %v2341_v22, 1e-24  ;;  %v2573_v60 = vmul.f32 %v2399_v39, %v344_v6  ;;  %v339_v22 = vsel %vm2540_vm2, %v2377_v34, %v335_v3 }
  0xc4   :  { %v2504_v11 = vpop.eup %1865  ;;  %v403_v62 = vpop.xlane.xlu0 %402  ;;  %v2518_v31 = vmax.f32 %v397_v28, 1e-24  ;;  %v2568_v56 = vmax.f32 %v393_v59, 1e-24  ;;  %v568_v59 = vsub.f32 1.5, %v567_v2  ;;  %vm346_vm2 = vweird.f32 %v2345_v36 }
  0xc5   :  { %v545_v12 = vmul.f32 %v2504_v11, %v2453_v37  ;;  %v2592_v58 = vmax.f32 %v403_v62, 1e-24  ;;  %v2598_v3 = vmax.f32 %v2348_v47, 1e-24  ;;  %v596_v28 = vmul.f32 14.285714, %v329_v33 }
  0xc6   :  { %1869 = vrsqrt.f32 %v2518_v31  ;;  %vm551_vm14 = vweird.f32 %v2504_v11 }
  0xc7   :  { %v546_v0 = vmul.f32 %v2504_v11, %v545_v12  ;;  %v2570_v12 = vpop.eup %1867  ;;  %1871 = vrsqrt.f32 %v2516_v30  ;;  %v353_v30 = vmul.f32 0.5, %v352_v23  ;;  %4098 = vst [vmem:[#allocation26_spill] sm:$0xff] %v2598_v3  ;;  %v569_v23 = vmul.f32 %v2448_v51, %v568_v59 }
  0xc8   :  { %1873 = vrsqrt.f32 %v2533_v17  ;;  %v575_v6 = vmul.f32 %v2570_v12, %v2486_v8  ;;  %vm581_vm1 = vweird.f32 %v2570_v12  ;;  %v792_v8 = vld [vmem:[%s3986_s0 + $0x30] sm:$0xff] }
  0xc9   :  { %v547_v29 = vmul.f32 0.5, %v546_v0  ;;  %1875 = vrsqrt.f32 %v2546_v18  ;;  %v797_v0 = vld [vmem:[%s3986_s0 + $0x58] sm:$0xff]  ;;  %v573_v9 = vsel %vm2643_vm13, %v2448_v51, %v569_v23  ;;  %vm582_vm7 = vmor %vm580_vm11, %vm581_vm1  ;;  %v4102_v23 = vsel %vm2471_vm10, %v2311_v21, %v2459_v61  ;;  %v800_v21 = vld [vmem:[%s3986_s0 + $0x70] sm:$0xff] }
  0xca   :  { %v576_v2 = vmul.f32 %v2570_v12, %v575_v6  ;;  %1877 = vrsqrt.f32 %v2568_v56  ;;  %825 = vperm.xlu1 %1825, %v793_v19   ;;  %v354_v6 = vsub.f32 1.5, %v353_v30  ;;  %v2633_v30 = vmul.f32 %v596_v28, %v2188_v26  ;;  %vm2703_vm10 = vmor %vm550_vm15, %vm551_vm14 }
  0xcb   :  { %v395_v44 = vpop.xlane.xlu1 %394  ;;  %1879 = vrsqrt.f32 %v2592_v58  ;;  %816 = vperm.xlu2 %1823, %v790_v41   ;;  %v548_v24 = vsub.f32 1.5, %v547_v29  ;;  %837 = vperm.xlu0 %1824, %v797_v0   ;;  %vm530_vm11 = vweird.f32 %v2518_v31  ;;  %vm2730_vm13 = vmor %vm266_vm8, %vm267_vm4  ;;  %vm560_vm4 = vweird.f32 %v2592_v58 }
  0xcc   :  { %v2594_v38 = vmax.f32 %v395_v44, 1e-24  ;;  %v399_v34 = vpop.xlane.xlu0 %398  ;;  %v2605_v62 = vpop.eup %1869  ;;  %v597_v44 = vmul.f32 14.285714, %v339_v22  ;;  %v577_v19 = vmul.f32 0.5, %v576_v2  ;;  %v796_v2 = vld [vmem:[%s3986_s0 + $0x50] sm:$0xff]  ;;  %v2670_v3 = vmul.f32 %v2476_v54, %v354_v6  ;;  %vm2744_vm14 = vmor %vm276_vm5, %vm277_vm6 }
  0xcd   :  { %v2611_v47 = vmax.f32 %v399_v34, 1e-24  ;;  %v2616_v33 = vpop.eup %1871  ;;  %v2621_v34 = vmax.f32 %v2391_v49, 1e-24  ;;  %v525_v41 = vmul.f32 %v2605_v62, %v2518_v31  ;;  %v549_v28 = vmul.f32 %v2504_v11, %v548_v24  ;;  %v798_v31 = vld [vmem:[%s3986_s0 + $0x60] sm:$0xff] }
  0xce   :  { %4099 = vst [vmem:[#allocation27_spill] sm:$0xff] %v2616_v33  ;;  %1881 = vrsqrt.f32 %v2594_v38  ;;  %v2626_v22 = vpop.eup %1873  ;;  %v578_v29 = vsub.f32 1.5, %v577_v19  ;;  %v586_v24 = vmul.f32 14.285714, %v4102_v23  ;;  %vm531_vm8 = vweird.f32 %v2605_v62  ;;  %v4121_v23 = vld [vmem:[#allocation9_spill] sm:$0xff] }
  0xcf   :  { %v2635_v49 = vpop.eup %1875  ;;  %v526_v26 = vmul.f32 %v2605_v62, %v525_v41  ;;  %1883 = vrsqrt.f32 %v2611_v47  ;;  %v2665_v41 = vmul.f32 %v597_v44, %v2183_v25  ;;  %v4103_v25 = vsel %vm2527_vm0, %v2327_v5, %v2479_v4 }
  0xd0   :  { %v2654_v0 = vpop.eup %1877  ;;  %v579_v19 = vmul.f32 %v2570_v12, %v578_v29  ;;  %v587_v44 = vmul.f32 14.285714, %v4103_v25  ;;  %v2687_v6 = vmul.f32 %v2626_v22, %v2533_v17  ;;  %1885 = vrsqrt.f32 %v2621_v34 }
  0xd1   :  { %v2667_v33 = vpop.eup %1879  ;;  %v527_v51 = vmul.f32 0.5, %v526_v26  ;;  %v638_v4 = vmul.f32 %v573_v9, %v2211_v42  ;;  %v622_v59 = vpack.c.bf16 %v2665_v41, %v2633_v30  ;;  %vm356_vm0 = vweird.f32 %v2410_v27 }
  0xd2   :  { %v583_v55 = vsel %vm582_vm7, %v2570_v12, %v579_v19  ;;  %v555_v61 = vmul.f32 %v2667_v33, %v2592_v58  ;;  %834 = vperm.xlu1 %1825, %v796_v2   ;;  %v2709_v12 = vmul.f32 %v2635_v49, %v2546_v18  ;;  %v553_v42 = vsel %vm2703_vm10, %v2504_v11, %v549_v28  ;;  %vm2796_vm10 = vmor %vm346_vm2, %vm347_vm3 }
  0xd3   :  { %v639_v29 = vmul.f32 %v583_v55, %v2217_v50  ;;  %822 = vperm.xlu2 %1823, %v792_v8   ;;  %v505_v37 = vmul.f32 %v2654_v0, %v2568_v56  ;;  %846 = vperm.xlu0 %1824, %v800_v21   ;;  %v528_v11 = vsub.f32 1.5, %v527_v51  ;;  %v2735_v19 = vmul.f32 %v586_v24, %v2099_v1  ;;  %vm358_vm3 = vmor %vm356_vm0, %vm357_vm9 }
  0xd4   :  { %v2696_v5 = vpop.eup %1881  ;;  %v556_v26 = vmul.f32 %v2667_v33, %v555_v61  ;;  %v2738_v8 = vmul.f32 %v587_v44, %v2120_v7  ;;  %v269_v1 = vsel %vm2730_vm13, %v2350_v53, %v2494_v32  ;;  %v636_v7 = vmul.f32 %v553_v42, %v2215_v48  ;;  %vm2844_vm9 = vmor %vm530_vm11, %vm531_vm8 }
  0xd5   :  { %v515_v50 = vmul.f32 %v2696_v5, %v2594_v38  ;;  %v2724_v2 = vpop.eup %1883  ;;  %v647_v28 = vpack.c.bf16 %v639_v29, %v638_v4  ;;  %v279_v25 = vsel %vm2744_vm14, %v2334_v40, %v2491_v35  ;;  %vm4110_vm5 = vweird.f32 %v2332_v43  ;;  %v795_v40 = vld [vmem:[%s3986_s0 + $0x48] sm:$0xff]  ;;  %v4127_v43 = vld [vmem:[#allocation17_spill] sm:$0xff] }
  0xd6   :  { %v557_v63 = vmul.f32 0.5, %v556_v26  ;;  %v535_v51 = vmul.f32 %v2724_v2, %v2611_v47  ;;  %v617_v24 = vpack.c.bf16 %v2738_v8, %v2735_v19  ;;  %v2766_v44 = vpop.eup %1885  ;;  %vm2772_vm6 = vmor %vm4110_vm5, %vm317_vm12  ;;  %v506_v53 = vmul.f32 %v2654_v0, %v505_v37 }
  0xd7   :  { %648 = vmatpush.bf16.xpose.msra.mxu0 %v647_v28  ;;  %1793 = vmatpush.bf16.xpose.msra.mxu1 %v647_v28  ;;  %vm561_vm15 = vweird.f32 %v2667_v33  ;;  %v516_v55 = vmul.f32 %v2696_v5, %v515_v50  ;;  %vm4113_vm1 = vweird.f32 %v2393_v16  ;;  %vm4114_vm12 = vweird.f32 %v2337_v45 }
  0xd8   :  { %v558_v32 = vsub.f32 1.5, %v557_v63  ;;  %1794 = vmatpush.bf16.xpose.msra.mxu2 %v647_v28  ;;  %1795 = vmatpush.bf16.xpose.msra.mxu3 %v647_v28  ;;  %vm2786_vm7 = vmor %vm4114_vm12, %vm4113_vm1  ;;  %v529_v35 = vmul.f32 %v2605_v62, %v528_v11  ;;  %v536_v61 = vmul.f32 %v2724_v2, %v535_v51  ;;  %v590_v21 = vmul.f32 14.285714, %v269_v1  ;;  %v4120_v11 = vld [vmem:[#allocation10_spill] sm:$0xff] }
  0xd9   :  { %v591_v4 = vmul.f32 14.285714, %v279_v25  ;;  %vm541_vm13 = vweird.f32 %v2724_v2  ;;  %v309_v29 = vsel %vm2786_vm7, %v2393_v16, %v2557_v10  ;;  %v319_v42 = vsel %vm2772_vm6, %v2385_v20, %v2554_v57  ;;  %vm562_vm2 = vmor %vm560_vm4, %vm561_vm15 }
  0xda   :  { %v559_v45 = vmul.f32 %v2667_v33, %v558_v32  ;;  %843 = vperm.xlu1 %1825, %v799_v52   ;;  %v537_v36 = vmul.f32 0.5, %v536_v61  ;;  %v2815_v37 = vmul.f32 %v590_v21, %v2146_v14  ;;  %v594_v50 = vmul.f32 14.285714, %v309_v29  ;;  %v4119_v14 = vld [vmem:[#allocation15_spill] sm:$0xff]  ;;  %v4126_v32 = vld [vmem:[#allocation26_spill] sm:$0xff]  ;;  %v4128_v61 = vld [vmem:[#allocation13_spill] sm:$0xff] }
  0xdb   :  { %831 = vperm.xlu2 %1823, %v795_v40   ;;  %v2818_v26 = vmul.f32 %v591_v4, %v2141_v13  ;;  %v517_v10 = vmul.f32 0.5, %v516_v55  ;;  %v595_v9 = vmul.f32 14.285714, %v319_v42  ;;  %v349_v20 = vsel %vm2796_vm10, %v2399_v39, %v2573_v60  ;;  %v4130_v29 = vld [vmem:[#allocation27_spill] sm:$0xff] }
  0xdc   :  { %v563_v16 = vsel %vm562_vm2, %v2667_v33, %v559_v45  ;;  %v538_v58 = vsub.f32 1.5, %v537_v36  ;;  %v2833_v33 = vmul.f32 %v594_v50, %v4120_v11  ;;  %v507_v28 = vmul.f32 0.5, %v506_v53 }
  0xdd   :  { %v637_v57 = vmul.f32 %v563_v16, %v4119_v14  ;;  %v619_v13 = vpack.c.bf16 %v2818_v26, %v2815_v37  ;;  %v2836_v63 = vmul.f32 %v595_v9, %v4121_v23  ;;  %v359_v39 = vsel %vm358_vm3, %v2476_v54, %v2670_v3 }
  0xde   :  { %v598_v60 = vmul.f32 14.285714, %v349_v20  ;;  %v539_v51 = vmul.f32 %v2724_v2, %v538_v58  ;;  %vm540_vm0 = vweird.f32 %v2611_v47  ;;  %v599_v52 = vmul.f32 14.285714, %v359_v39 }
  0xdf   :  { %v646_v1 = vpack.c.bf16 %v637_v57, %v636_v7  ;;  %v496_v25 = vmul.f32 %v2635_v49, %v2709_v12  ;;  %v533_v54 = vsel %vm2844_vm9, %v2605_v62, %v529_v35  ;;  %v518_v3 = vsub.f32 1.5, %v517_v10  ;;  %vm542_vm11 = vmor %vm540_vm0, %vm541_vm13  ;;  %v4124_v12 = vld [vmem:[#allocation11_spill] sm:$0xff]  ;;  %v4125_v62 = vld [vmem:[#allocation12_spill] sm:$0xff] }
  0xe0   :  { %v621_v47 = vpack.c.bf16 %v2836_v63, %v2833_v33  ;;  %1887 = vrsqrt.f32 %v2566_v46  ;;  %v543_v7 = vsel %vm542_vm11, %v2724_v2, %v539_v51  ;;  %v2865_v48 = vmul.f32 %v598_v60, %v4124_v12  ;;  %v4135_v60 = vld [vmem:[#allocation16_spill] sm:$0xff] }
  0xe1   :  { %649 = vmatpush.bf16.xpose.msra.mxu0 %v646_v1  ;;  %1796 = vmatpush.bf16.xpose.msra.mxu1 %v646_v1  ;;  %v2868_v53 = vmul.f32 %v599_v52, %v4125_v62  ;;  %1889 = vrsqrt.f32 %v4126_v32  ;;  %v486_v55 = vmul.f32 %v2626_v22, %v2687_v6  ;;  %v508_v40 = vsub.f32 1.5, %v507_v28  ;;  %v4129_v6 = vld [vmem:[#allocation25_spill] sm:$0xff]  ;;  %v4136_v52 = vld [vmem:[#allocation14_spill] sm:$0xff] }
  0xe2   :  { %v635_v35 = vmul.f32 %v543_v7, %v4127_v43  ;;  %1797 = vmatpush.bf16.xpose.msra.mxu2 %v646_v1  ;;  %1798 = vmatpush.bf16.xpose.msra.mxu3 %v646_v1  ;;  %v475_v2 = vmul.f32 %v2766_v44, %v2621_v34  ;;  %v634_v21 = vmul.f32 %v533_v54, %v4128_v61  ;;  %v497_v15 = vmul.f32 0.5, %v496_v25  ;;  %v2020_v61 = vld [vmem:[#allocation6 + $0x30] sm:$0xff] }
  0xe3   :  { %840 = vperm.xlu2 %1823, %v798_v31   ;;  %v623_v4 = vpack.c.bf16 %v2868_v53, %v2865_v48  ;;  %v519_v45 = vmul.f32 %v2696_v5, %v518_v3  ;;  %vm520_vm14 = vweird.f32 %v2594_v38  ;;  %vm521_vm4 = vweird.f32 %v2696_v5 }
  0xe4   :  { %v465_v42 = vmul.f32 %v4130_v29, %v4129_v6  ;;  %v645_v36 = vpack.c.bf16 %v635_v35, %v634_v21  ;;  %v487_v50 = vmul.f32 0.5, %v486_v55  ;;  %v509_v16 = vmul.f32 %v2654_v0, %v508_v40  ;;  %vm2889_vm6 = vmor %vm520_vm14, %vm521_vm4 }
  0xe5   :  { %vm510_vm8 = vweird.f32 %v2568_v56  ;;  %vm511_vm5 = vweird.f32 %v2654_v0  ;;  %v476_v20 = vmul.f32 %v2766_v44, %v475_v2  ;;  %v498_v14 = vsub.f32 1.5, %v497_v15  ;;  %v801_v56 = vld [vmem:[%s3986_s0 + $0x78] sm:$0xff] }
  0xe6   :  { %v2887_v10 = vpop.eup %1887  ;;  %v523_v57 = vsel %vm2889_vm6, %v2696_v5, %v519_v45  ;;  %vm2902_vm15 = vmor %vm510_vm8, %vm511_vm5  ;;  %v466_v11 = vmul.f32 %v4130_v29, %v465_v42  ;;  %v488_v28 = vsub.f32 1.5, %v487_v50  ;;  %vm500_vm1 = vweird.f32 %v2546_v18 }
  0xe7   :  { %v2893_v38 = vpop.eup %1889  ;;  %v513_v23 = vsel %vm2902_vm15, %v2654_v0, %v509_v16  ;;  %v455_v5 = vmul.f32 %v2887_v10, %v2566_v46  ;;  %v633_v27 = vmul.f32 %v523_v57, %v4135_v60  ;;  %v477_v51 = vmul.f32 0.5, %v476_v20  ;;  %v4138_v60 = vld [vmem:[#allocation20_spill] sm:$0xff] }
  0xe8   :  { %v445_v39 = vmul.f32 %v2893_v38, %v4126_v32  ;;  %v499_v1 = vmul.f32 %v2635_v49, %v498_v14  ;;  %vm501_vm12 = vweird.f32 %v2635_v49  ;;  %v632_v0 = vmul.f32 %v513_v23, %v4136_v52  ;;  %v2023_v14 = vld [vmem:[#allocation6 + $0x18] sm:$0xff]  ;;  %v4142_v52 = vld [vmem:[#allocation21_spill] sm:$0xff] }
  0xe9   :  { %650 = vmatpush.bf16.xpose.msra.mxu0 %v645_v36  ;;  %1799 = vmatpush.bf16.xpose.msra.mxu1 %v645_v36  ;;  %v467_v25 = vmul.f32 0.5, %v466_v11  ;;  %v489_v54 = vmul.f32 %v2626_v22, %v488_v28  ;;  %vm490_vm7 = vweird.f32 %v2533_v17  ;;  %vm491_vm10 = vweird.f32 %v2626_v22  ;;  %vm502_vm13 = vmor %vm500_vm1, %vm501_vm12  ;;  %v2019_v17 = vld [vmem:[#allocation6 + $0x38] sm:$0xff] }
  0xea   :  { %1800 = vmatpush.bf16.xpose.msra.mxu2 %v645_v36  ;;  %1801 = vmatpush.bf16.xpose.msra.mxu3 %v645_v36  ;;  %v644_v3 = vpack.c.bf16 %v633_v27, %v632_v0  ;;  %v456_v31 = vmul.f32 %v2887_v10, %v455_v5  ;;  %v446_v7 = vmul.f32 %v2893_v38, %v445_v39  ;;  %v478_v12 = vsub.f32 1.5, %v477_v51  ;;  %vm492_vm2 = vmor %vm490_vm7, %vm491_vm10  ;;  %v4139_v27 = vld [vmem:[#allocation19_spill] sm:$0xff] }
  0xeb   :  { %849 = vperm.xlu2 %1823, %v801_v56   ;;  %v503_v18 = vsel %vm502_vm13, %v2635_v49, %v499_v1  ;;  %v468_v62 = vsub.f32 1.5, %v467_v25  ;;  %v493_v55 = vsel %vm492_vm2, %v2626_v22, %v489_v54  ;;  %vm481_vm3 = vweird.f32 %v2766_v44  ;;  %v2024_v56 = vld [vmem:[#allocation6 + $0x10] sm:$0xff]  ;;  %v4141_v1 = vld [vmem:[#allocation18_spill] sm:$0xff] }
  0xec   :  { %v631_v40 = vmul.f32 %v2019_v17, %v503_v18  ;;  %v457_v43 = vmul.f32 0.5, %v456_v31  ;;  %v447_v35 = vmul.f32 0.5, %v446_v7  ;;  %v479_v2 = vmul.f32 %v2766_v44, %v478_v12  ;;  %v4145_v31 = vld [vmem:[#allocation22_spill] sm:$0xff] }
  0xed   :  { %v630_v21 = vmul.f32 %v2020_v61, %v493_v55  ;;  %v469_v49 = vmul.f32 %v4130_v29, %v468_v62  ;;  %vm470_vm9 = vweird.f32 %v4129_v6  ;;  %vm471_vm0 = vweird.f32 %v4130_v29  ;;  %v2021_v6 = vld [vmem:[#allocation6 + $0x28] sm:$0xff] }
  0xee   :  { %vm480_vm11 = vweird.f32 %v2621_v34  ;;  %v458_v15 = vsub.f32 1.5, %v457_v43  ;;  %v448_v45 = vsub.f32 1.5, %v447_v35  ;;  %vm472_vm4 = vmor %vm470_vm9, %vm471_vm0  ;;  %vm460_vm8 = vweird.f32 %v2566_v46 }
  0xef   :  { %vm482_vm14 = vmor %vm480_vm11, %vm481_vm3  ;;  %v643_v22 = vpack.c.bf16 %v631_v40, %v630_v21  ;;  %v473_v36 = vsel %vm472_vm4, %v4130_v29, %v469_v49  ;;  %vm461_vm5 = vweird.f32 %v2887_v10  ;;  %vm451_vm6 = vweird.f32 %v2893_v38 }
  0xf0   :  { %v483_v42 = vsel %vm482_vm14, %v2766_v44, %v479_v2  ;;  %v459_v34 = vmul.f32 %v2887_v10, %v458_v15  ;;  %v449_v16 = vmul.f32 %v2893_v38, %v448_v45  ;;  %v2022_v44 = vld [vmem:[#allocation6 + $0x20] sm:$0xff]  ;;  %vm462_vm15 = vmor %vm460_vm8, %vm461_vm5  ;;  %vm450_vm1 = vweird.f32 %v4126_v32 }
  0xf1   :  { %651 = vmatpush.bf16.xpose.msra.mxu0 %v644_v3  ;;  %1802 = vmatpush.bf16.xpose.msra.mxu1 %v644_v3  ;;  %v629_v50 = vmul.f32 %v2021_v6, %v483_v42  ;;  %v628_v9 = vmul.f32 %v2022_v44, %v473_v36  ;;  %vm452_vm12 = vmor %vm450_vm1, %vm451_vm6  ;;  %v698_v28 = vlaneseq  ;;  %v4140_v51 = vpack.c.bf16 %v4138_v60, %v4139_v27 }
  0xf2   :  { %1803 = vmatpush.bf16.xpose.msra.mxu2 %v644_v3  ;;  %1804 = vmatpush.bf16.xpose.msra.mxu3 %v644_v3  ;;  %v463_v20 = vsel %vm462_vm15, %v2887_v10, %v459_v34  ;;  %v453_v46 = vsel %vm452_vm12, %v2893_v38, %v449_v16  ;;  %v4137_v10 = vld [vmem:[#allocation24_spill] sm:$0xff]  ;;  %v2956_v38 = vld [vmem:[%s3987_s1] ss:$0 sm:$0xff]  ;;  %v4143_v0 = vpack.c.bf16 %v4141_v1, %v4142_v52  ;;  %v4018_v25 = vmov 0.0   ;;  %v4144_v3 = vld [vmem:[#allocation23_spill] sm:$0xff] }
  0xf3   :  { %v642_v29 = vpack.c.bf16 %v629_v50, %v628_v9  ;;  %v627_v57 = vmul.f32 %v2023_v14, %v463_v20  ;;  %v626_v58 = vmul.f32 %v2024_v56, %v453_v46  ;;  %v2942_v32 = vshrl.u32 %v698_v28, 7 }
  0xf4   :  { %v2944_v23 = vand.u32 127, %v698_v28  ;;  %v4146_v7 = vpack.c.bf16 %v4144_v3, %v4145_v31 }
  0xf5   :  { %v641_v11 = vpack.c.bf16 %v627_v57, %v626_v58  ;;  %v2964_v39 = vadd.s32 24, %v2942_v32  ;;  %v2996_v30 = vadd.s32 16, %v2942_v32  ;;  %v2999_v41 = vadd.s32 8, %v2942_v32 }
  0xf6   :  { %vm737_vm7 = vcmp.lt.s32.totalorder %v2944_v23, 16  ;;  %vm738_vm10 = vcmp.ne.s32.totalorder %v2942_v32, %v2944_v23  ;;  %v3002_v62 = vadd.s32 48, %v2942_v32  ;;  %v3005_v55 = vadd.s32 32, %v2942_v32 }
  0xf7   :  { %vm754_vm13 = vmand %vm738_vm10, %vm737_vm7  ;;  %vm4012_vm9 = vcmp.ne.s32.totalorder %v2964_v39, %v2944_v23  ;;  %vm4014_vm4 = vcmp.ne.s32.totalorder %v2996_v30, %v2944_v23  ;;  %vm739_vm8 = vcmp.ne.s32.totalorder %v2999_v41, %v2944_v23  ;;  %v3038_v19 = vadd.s32 40, %v2942_v32 }
  0xf8   :  { %vm757_vm0 = vmand %vm4012_vm9, %vm737_vm7  ;;  %vm4013_vm5 = vcmp.ne.s32.totalorder %v3002_v62, %v2944_v23  ;;  %vm742_vm15 = vcmp.ne.s32.totalorder %v3005_v55, %v2944_v23  ;;  %v3060_v33 = vadd.s32 72, %v2942_v32  ;;  %v3065_v63 = vadd.s32 64, %v2942_v32 }
  0xf9   :  { %652 = vmatpush.bf16.xpose.msra.mxu0 %v643_v22  ;;  %1805 = vmatpush.bf16.xpose.msra.mxu1 %v643_v22  ;;  %vm756_vm6 = vmand %vm4014_vm4, %vm737_vm7  ;;  %vm4017_vm9 = vcmp.ne.s32.totalorder %v3038_v19, %v2944_v23  ;;  %v3101_v17 = vadd.s32 56, %v2942_v32  ;;  %v3114_v35 = vadd.s32 96, %v2942_v32  ;;  %v3121_v21 = vadd.s32 88, %v2942_v32 }
  0xfa   :  { %1806 = vmatpush.bf16.xpose.msra.mxu2 %v643_v22  ;;  %1807 = vmatpush.bf16.xpose.msra.mxu3 %v643_v22  ;;  %vm755_vm1 = vmand %vm739_vm8, %vm737_vm7  ;;  %v3152_v45 = vadd.s32 80, %v2942_v32  ;;  %v3172_v16 = vadd.s32 112, %v2942_v32  ;;  %v3182_v9 = vadd.s32 104, %v2942_v32 }
  0xfb   :  { %vm3045_vm12 = vmand %vm4013_vm5, %vm737_vm7 }
 0x101   :  { %653 = vmatpush.bf16.xpose.msra.mxu0 %v642_v29  ;;  %1808 = vmatpush.bf16.xpose.msra.mxu1 %v642_v29 }
 0x102   :  { %1809 = vmatpush.bf16.xpose.msra.mxu2 %v642_v29  ;;  %1810 = vmatpush.bf16.xpose.msra.mxu3 %v642_v29 }
 0x109   :  { %654 = vmatpush.bf16.xpose.msra.mxu0 %v641_v11  ;;  %1811 = vmatpush.bf16.xpose.msra.mxu1 %v641_v11 }
 0x10a   :  { %1812 = vmatpush.bf16.xpose.msra.mxu2 %v641_v11  ;;  %1813 = vmatpush.bf16.xpose.msra.mxu3 %v641_v11 }
 0x111   :  { %655 = vmatpush.bf16.xpose.msra.mxu0 %v4137_v10  ;;  %1814 = vmatpush.bf16.xpose.msra.mxu1 %v4137_v10 }
 0x112   :  { %1815 = vmatpush.bf16.xpose.msra.mxu2 %v4137_v10  ;;  %1816 = vmatpush.bf16.xpose.msra.mxu3 %v4137_v10 }
 0x115   :  { %v805_v5 = vpop.permute.xlu2 %804 }
 0x116   :  { %vm852_vm2 = vcmp.eq.s32.totalorder %v805_v5, %v2956_v38 }
 0x117   :  { %vm868_vm3 = vmand %vm852_vm2, %vm754_vm13 }
 0x118   :  { %656 = vmatmul.bf16.vlgmr.msra.gmra.mxu0 %v4140_v51  ;;  %666 = vmatmul.bf16.vlgmr.msra.gmra.mxu1 %v4143_v0  ;;  %v2974_v54 = vsel %vm868_vm3, 1.0, %v4018_v25  ;;  %vm3055_vm2 = vmand %vm742_vm15, %vm737_vm7 }
 0x119   :  { %676 = vmatmul.bf16.vlgmr.msra.gmra.mxu2 %v4146_v7  ;;  %686 = vmatmul.bf16.vlgmr.msra.gmra.mxu3 %v622_v59 }
 0x11a   :  { %1413 = vadd.xlane.f32.xlu2 %v2974_v54 }
 0x11d   :  { %v814_v12 = vpop.permute.xlu2 %813 }
 0x11e   :  { %vm855_vm11 = vcmp.eq.s32.totalorder %v814_v12, %v2956_v38 }
 0x11f   :  { %vm871_vm14 = vmand %vm855_vm11, %vm757_vm0 }
 0x120   :  { %v2992_v18 = vsel %vm871_vm14, 1.0, %v4018_v25 }
 0x122   :  { %1419 = vadd.xlane.f32.xlu2 %v2992_v18 }
 0x125   :  { %v817_v59 = vpop.permute.xlu2 %816 }
 0x126   :  { %vm856_vm5 = vcmp.eq.s32.totalorder %v817_v59, %v2956_v38 }
 0x128   :  { %661 = vmatmul.bf16.gmra.mxu0 %v617_v24  ;;  %671 = vmatmul.bf16.gmra.mxu1 %v619_v13 }
 0x129   :  { %681 = vmatmul.bf16.gmra.mxu2 %v621_v47  ;;  %691 = vmatmul.bf16.gmra.mxu3 %v623_v4 }
 0x12c   :  { %v811_v8 = vpop.permute.xlu1 %810 }
 0x12d   :  { %v823_v37 = vpop.permute.xlu2 %822  ;;  %vm854_vm13 = vcmp.eq.s32.totalorder %v811_v8, %v2956_v38  ;;  %v808_v26 = vpop.permute.xlu0 %807 }
 0x12e   :  { %vm858_vm3 = vcmp.eq.s32.totalorder %v823_v37, %v2956_v38  ;;  %vm853_vm0 = vcmp.eq.s32.totalorder %v808_v26, %v2956_v38  ;;  %vm870_vm11 = vmand %vm854_vm13, %vm756_vm6 }
 0x12f   :  { %v3068_v47 = vsel %vm870_vm11, 1.0, %v4018_v25  ;;  %vm869_vm14 = vmand %vm853_vm0, %vm755_vm1  ;;  %vm4016_vm1 = vcmp.ne.s32.totalorder %v3060_v33, %v2944_v23  ;;  %vm746_vm0 = vcmp.ne.s32.totalorder %v3065_v63, %v2944_v23 }
 0x130   :  { %1417 = vadd.xlane.f32.xlu0 %v3068_v47  ;;  %v3075_v48 = vsel %vm869_vm14, 1.0, %v4018_v25  ;;  %vm874_vm6 = vmand %vm858_vm3, %vm3045_vm12 }
 0x131   :  { %1415 = vadd.xlane.f32.xlu1 %v3075_v48  ;;  %v3081_v53 = vsel %vm874_vm6, 1.0, %v4018_v25  ;;  %vm759_vm13 = vmand %vm4017_vm9, %vm737_vm7 }
 0x132   :  { %1425 = vadd.xlane.f32.xlu2 %v3081_v53  ;;  %vm872_vm12 = vmand %vm856_vm5, %vm3055_vm2 }
 0x133   :  { %vm763_vm3 = vmand %vm4016_vm1, %vm737_vm7  ;;  %v3118_v2 = vsel %vm872_vm12, 1.0, %v4018_v25  ;;  %vm750_vm12 = vcmp.ne.s32.totalorder %v3114_v35, %v2944_v23 }
 0x134   :  { %v820_v4 = vpop.permute.xlu1 %819  ;;  %vm3109_vm14 = vmand %vm746_vm0, %vm737_vm7 }
 0x135   :  { %v832_v40 = vpop.permute.xlu2 %831  ;;  %vm857_vm11 = vcmp.eq.s32.totalorder %v820_v4, %v2956_v38  ;;  %v829_v61 = vpop.permute.xlu0 %828 }
 0x136   :  { %vm861_vm5 = vcmp.eq.s32.totalorder %v832_v40, %v2956_v38  ;;  %vm873_vm2 = vmand %vm857_vm11, %vm759_vm13  ;;  %vm860_vm6 = vcmp.eq.s32.totalorder %v829_v61, %v2956_v38  ;;  %vm4015_vm13 = vcmp.ne.s32.totalorder %v3101_v17, %v2944_v23 }
 0x137   :  { %v3124_v49 = vsel %vm873_vm2, 1.0, %v4018_v25  ;;  %vm877_vm4 = vmand %vm861_vm5, %vm763_vm3  ;;  %vm749_vm3 = vcmp.ne.s32.totalorder %v3121_v21, %v2944_v23 }
 0x138   :  { %1423 = vadd.xlane.f32.xlu0 %v3124_v49  ;;  %v3129_v22 = vsel %vm877_vm4, 1.0, %v4018_v25  ;;  %vm876_vm11 = vmand %vm860_vm6, %vm3109_vm14 }
 0x139   :  { %1421 = vadd.xlane.f32.xlu1 %v3118_v2  ;;  %vm761_vm4 = vmand %vm4015_vm13, %vm737_vm7  ;;  %v1769_v36 = vsel %vm876_vm11, 1.0, %v4018_v25  ;;  %vm748_vm11 = vcmp.ne.s32.totalorder %v3152_v45, %v2944_v23 }
 0x13a   :  { %1431 = vadd.xlane.f32.xlu2 %v3129_v22  ;;  %vm766_vm5 = vmand %vm750_vm12, %vm737_vm7 }
 0x13b   :  { %vm765_vm2 = vmand %vm749_vm3, %vm737_vm7 }
 0x13c   :  { %v826_v15 = vpop.permute.xlu1 %825 }
 0x13d   :  { %v841_v42 = vpop.permute.xlu2 %840  ;;  %vm859_vm14 = vcmp.eq.s32.totalorder %v826_v15, %v2956_v38  ;;  %v838_v6 = vpop.permute.xlu0 %837 }
 0x13e   :  { %vm864_vm6 = vcmp.eq.s32.totalorder %v841_v42, %v2956_v38  ;;  %vm875_vm13 = vmand %vm859_vm14, %vm761_vm4  ;;  %vm863_vm1 = vcmp.eq.s32.totalorder %v838_v6, %v2956_v38 }
 0x13f   :  { %v3163_v50 = vsel %vm875_vm13, 1.0, %v4018_v25  ;;  %vm880_vm9 = vmand %vm864_vm6, %vm766_vm5  ;;  %vm751_vm6 = vcmp.ne.s32.totalorder %v3182_v9, %v2944_v23 }
 0x140   :  { %1429 = vadd.xlane.f32.xlu0 %v1769_v36  ;;  %v3167_v34 = vsel %vm880_vm9, 1.0, %v4018_v25  ;;  %vm879_vm4 = vmand %vm863_vm1, %vm765_vm2  ;;  %vm752_vm9 = vcmp.ne.s32.totalorder %v3172_v16, %v2944_v23 }
 0x141   :  { %1427 = vadd.xlane.f32.xlu1 %v3163_v50  ;;  %vm764_vm13 = vmand %vm748_vm11, %vm737_vm7  ;;  %v3188_v29 = vsel %vm879_vm4, 1.0, %v4018_v25 }
 0x142   :  { %1437 = vadd.xlane.f32.xlu2 %v3167_v34  ;;  %vm768_vm2 = vmand %vm752_vm9, %vm737_vm7 }
 0x144   :  { %v835_v44 = vpop.permute.xlu1 %834 }
 0x145   :  { %vm862_vm5 = vcmp.eq.s32.totalorder %v835_v44, %v2956_v38  ;;  %v847_v20 = vpop.permute.xlu0 %846  ;;  %v3229_v5 = vpop.permute.xlu2 %849 }
 0x146   :  { %vm878_vm14 = vmand %vm862_vm5, %vm764_vm13  ;;  %vm866_vm1 = vcmp.eq.s32.totalorder %v847_v20, %v2956_v38 }
 0x147   :  { %v3191_v46 = vsel %vm878_vm14, 1.0, %v4018_v25  ;;  %vm882_vm4 = vmand %vm866_vm1, %vm768_vm2  ;;  %vm39_vm1 = vcmask 7168  }
 0x148   :  { %1435 = vadd.xlane.f32.xlu0 %v3188_v29  ;;  %vm767_vm13 = vmand %vm751_vm6, %vm737_vm7  ;;  %v3210_v57 = vsel %vm882_vm4, 1.0, %v4018_v25  ;;  %88 = vst.msk [vmem:[#allocation5] sm:$0xff] %vm39_vm1, %v4018_v25 }
 0x149   :  { %1433 = vadd.xlane.f32.xlu1 %v3191_v46  ;;  %56 = vst.msk [vmem:[#allocation3] sm:$0xff] %vm39_vm1, %v4018_v25 }
 0x14a   :  { %57 = vst.msk [vmem:[#allocation3 + $0x8] sm:$0xff] %vm39_vm1, %v4018_v25 }
 0x14b   :  { %58 = vst.msk [vmem:[#allocation3 + $0x10] sm:$0xff] %vm39_vm1, %v4018_v25 }
 0x14c   :  { %v844_v14 = vpop.permute.xlu1 %843  ;;  %59 = vst.msk [vmem:[#allocation3 + $0x18] sm:$0xff] %vm39_vm1, %v4018_v25 }
 0x14d   :  { %vm865_vm5 = vcmp.eq.s32.totalorder %v844_v14, %v2956_v38  ;;  %60 = vst.msk [vmem:[#allocation3 + $0x20] sm:$0xff] %vm39_vm1, %v4018_v25 }
 0x14e   :  { %vm881_vm14 = vmand %vm865_vm5, %vm767_vm13  ;;  %61 = vst.msk [vmem:[#allocation3 + $0x28] sm:$0xff] %vm39_vm1, %v4018_v25 }
 0x14f   :  { %v3213_v56 = vsel %vm881_vm14, 1.0, %v4018_v25  ;;  %62 = vst.msk [vmem:[#allocation3 + $0x30] sm:$0xff] %vm39_vm1, %v4018_v25 }
 0x150   :  { %1441 = vadd.xlane.f32.xlu0 %v3210_v57  ;;  %63 = vst.msk [vmem:[#allocation3 + $0x38] sm:$0xff] %vm39_vm1, %v4018_v25 }
 0x151   :  { %1439 = vadd.xlane.f32.xlu1 %v3213_v56  ;;  %64 = vst.msk [vmem:[#allocation3 + $0x40] sm:$0xff] %vm39_vm1, %v4018_v25 }
 0x152   :  { %65 = vst.msk [vmem:[#allocation3 + $0x48] sm:$0xff] %vm39_vm1, %v4018_v25 }
 0x153   :  { %66 = vst.msk [vmem:[#allocation3 + $0x50] sm:$0xff] %vm39_vm1, %v4018_v25 }
 0x154   :  { %67 = vst.msk [vmem:[#allocation3 + $0x58] sm:$0xff] %vm39_vm1, %v4018_v25 }
 0x155   :  { %68 = vst.msk [vmem:[#allocation3 + $0x60] sm:$0xff] %vm39_vm1, %v4018_v25 }
 0x156   :  { %69 = vst.msk [vmem:[#allocation3 + $0x68] sm:$0xff] %vm39_vm1, %v4018_v25 }
 0x157   :  { %70 = vst.msk [vmem:[#allocation3 + $0x70] sm:$0xff] %vm39_vm1, %v4018_v25 }
 0x158   :  { %71 = vst.msk [vmem:[#allocation3 + $0x78] sm:$0xff] %vm39_vm1, %v4018_v25 }
 0x159   :  { %72 = vst.msk [vmem:[#allocation4] sm:$0xff] %vm39_vm1, %v4018_v25 }
 0x15a   :  { %73 = vst.msk [vmem:[#allocation4 + $0x8] sm:$0xff] %vm39_vm1, %v4018_v25 }
 0x15b   :  { %74 = vst.msk [vmem:[#allocation4 + $0x10] sm:$0xff] %vm39_vm1, %v4018_v25 }
 0x15c   :  { %75 = vst.msk [vmem:[#allocation4 + $0x18] sm:$0xff] %vm39_vm1, %v4018_v25 }
 0x15d   :  { %76 = vst.msk [vmem:[#allocation4 + $0x20] sm:$0xff] %vm39_vm1, %v4018_v25 }
 0x15e   :  { %77 = vst.msk [vmem:[#allocation4 + $0x28] sm:$0xff] %vm39_vm1, %v4018_v25 }
 0x15f   :  { %78 = vst.msk [vmem:[#allocation4 + $0x30] sm:$0xff] %vm39_vm1, %v4018_v25 }
 0x160   :  { %79 = vst.msk [vmem:[#allocation4 + $0x38] sm:$0xff] %vm39_vm1, %v4018_v25 }
 0x161   :  { %80 = vst.msk [vmem:[#allocation4 + $0x40] sm:$0xff] %vm39_vm1, %v4018_v25 }
 0x162   :  { %81 = vst.msk [vmem:[#allocation4 + $0x48] sm:$0xff] %vm39_vm1, %v4018_v25 }
 0x163   :  { %82 = vst.msk [vmem:[#allocation4 + $0x50] sm:$0xff] %vm39_vm1, %v4018_v25 }
 0x164   :  { %83 = vst.msk [vmem:[#allocation4 + $0x58] sm:$0xff] %vm39_vm1, %v4018_v25 }
 0x165   :  { %84 = vst.msk [vmem:[#allocation4 + $0x60] sm:$0xff] %vm39_vm1, %v4018_v25 }
 0x166   :  { %85 = vst.msk [vmem:[#allocation4 + $0x68] sm:$0xff] %vm39_vm1, %v4018_v25 }
 0x167   :  { %86 = vst.msk [vmem:[#allocation4 + $0x70] sm:$0xff] %vm39_vm1, %v4018_v25 }
 0x168   :  { %87 = vst.msk [vmem:[#allocation4 + $0x78] sm:$0xff] %vm39_vm1, %v4018_v25 }
 0x169   :  { %89 = vst.msk [vmem:[#allocation5 + $0x8] sm:$0xff] %vm39_vm1, %v4018_v25 }
 0x16a   :  { %90 = vst.msk [vmem:[#allocation5 + $0x10] sm:$0xff] %vm39_vm1, %v4018_v25 }
 0x16b   :  { %91 = vst.msk [vmem:[#allocation5 + $0x18] sm:$0xff] %vm39_vm1, %v4018_v25 }
 0x16c   :  { %92 = vst.msk [vmem:[#allocation5 + $0x20] sm:$0xff] %vm39_vm1, %v4018_v25 }
 0x16d   :  { %93 = vst.msk [vmem:[#allocation5 + $0x28] sm:$0xff] %vm39_vm1, %v4018_v25 }
 0x16e   :  { %94 = vst.msk [vmem:[#allocation5 + $0x30] sm:$0xff] %vm39_vm1, %v4018_v25 }
 0x16f   :  { %95 = vst.msk [vmem:[#allocation5 + $0x38] sm:$0xff] %vm39_vm1, %v4018_v25 }
 0x170   :  { %96 = vst.msk [vmem:[#allocation5 + $0x40] sm:$0xff] %vm39_vm1, %v4018_v25 }
 0x171   :  { %97 = vst.msk [vmem:[#allocation5 + $0x48] sm:$0xff] %vm39_vm1, %v4018_v25 }
 0x172   :  { %98 = vst.msk [vmem:[#allocation5 + $0x50] sm:$0xff] %vm39_vm1, %v4018_v25 }
 0x173   :  { %99 = vst.msk [vmem:[#allocation5 + $0x58] sm:$0xff] %vm39_vm1, %v4018_v25 }
 0x174   :  { %100 = vst.msk [vmem:[#allocation5 + $0x60] sm:$0xff] %vm39_vm1, %v4018_v25 }
 0x175   :  { %101 = vst.msk [vmem:[#allocation5 + $0x68] sm:$0xff] %vm39_vm1, %v4018_v25 }
 0x176   :  { %102 = vst.msk [vmem:[#allocation5 + $0x70] sm:$0xff] %vm39_vm1, %v4018_v25 }
 0x177   :  { %103 = vst.msk [vmem:[#allocation5 + $0x78] sm:$0xff] %vm39_vm1, %v4018_v25 }
 0x18d   :  { %v1414_v0 = vpop.xlane.xlu2 %1413 }
 0x195   :  { %v657_v58 = vpop.f32.mrf.mxu0  ;;  %v667_v11 = vpop.f32.mrf.mxu1 }
 0x196   :  { %v3219_v28 = vsel %vm737_vm7, %v657_v58, -1e+30  ;;  %v3223_v10 = vsel %vm737_vm7, %v667_v11, -1e+30  ;;  %v1420_v6 = vpop.xlane.xlu2 %1419 }
 0x197   :  { %924 = vmax.xlane.f32.xlu2 %v3223_v10  ;;  %916 = vmax.xlane.f32.xlu1 %v3219_v28  ;;  %v1321_v38 = vmul.f32 %v3118_v2, %v3223_v10  ;;  %v1317_v51 = vmul.f32 %v2974_v54, %v3219_v28  ;;  %v1397_v54 = vld [vmem:[#allocation5] sm:$0xff] }
 0x198   :  { %v1445_v31 = vadd.f32 %v1414_v0, %v1397_v54  ;;  %v1399_v0 = vld [vmem:[#allocation5 + $0x10] sm:$0xff] }
 0x199   :  { %1341 = vadd.xlane.f32.xlu0 %v1321_v38 }
 0x19a   :  { %1461 = vst.msk [vmem:[#allocation5] sm:$0xff] %vm39_vm1, %v1445_v31 }
 0x19c   :  { %v677_v60 = vpop.f32.mrf.mxu2  ;;  %v687_v3 = vpop.f32.mrf.mxu3 }
 0x19d   :  { %v3239_v27 = vsel %vm737_vm7, %v677_v60, -1e+30  ;;  %v669_v52 = vpop.f32.mrf.mxu1  ;;  %v659_v12 = vpop.f32.mrf.mxu0  ;;  %v3268_v59 = vsel %vm737_vm7, %v687_v3, -1e+30 }
 0x19e   :  { %v1325_v1 = vmul.f32 %v1769_v36, %v3239_v27  ;;  %v3259_v7 = vsel %vm737_vm7, %v669_v52, -1e+30  ;;  %v3279_v24 = vsel %vm737_vm7, %v659_v12, -1e+30  ;;  %v1329_v21 = vmul.f32 %v3167_v34, %v3268_v59 }
 0x19f   :  { %1333 = vadd.xlane.f32.xlu1 %v1317_v51  ;;  %v1322_v8 = vmul.f32 %v3124_v49, %v3259_v7  ;;  %v1318_v42 = vmul.f32 %v3075_v48, %v3279_v24  ;;  %v1400_v51 = vld [vmem:[#allocation5 + $0x18] sm:$0xff] }
 0x1a0   :  { %1349 = vadd.xlane.f32.xlu2 %v1325_v1  ;;  %v1398_v1 = vld [vmem:[#allocation5 + $0x8] sm:$0xff]  ;;  %v1448_v31 = vadd.f32 %v1420_v6, %v1400_v51 }
 0x1a1   :  { %932 = vmax.xlane.f32.xlu0 %v3239_v27  ;;  %v3288_v26 = vld [vmem:[#allocation5] sm:$0xff] }
 0x1a2   :  { %1736 = vst.msk [vmem:[%s3991_s5] sm:$0xff] %vm39_vm1, %v3288_v26 }
 0x1a3   :  { %v1418_v36 = vpop.xlane.xlu0 %1417  ;;  %1464 = vst.msk [vmem:[#allocation5 + $0x18] sm:$0xff] %vm39_vm1, %v1448_v31 }
 0x1a4   :  { %v679_v37 = vpop.f32.mrf.mxu2  ;;  %v689_v13 = vpop.f32.mrf.mxu3 }
 0x1a5   :  { %v3301_v4 = vsel %vm737_vm7, %v679_v37, -1e+30  ;;  %v3307_v40 = vsel %vm737_vm7, %v689_v13, -1e+30  ;;  %v672_v43 = vpop.f32.mrf.mxu1  ;;  %v662_v2 = vpop.f32.mrf.mxu0  ;;  %v1401_v37 = vld [vmem:[#allocation5 + $0x20] sm:$0xff]  ;;  %v1447_v13 = vadd.f32 %v1418_v36, %v1399_v0 }
 0x1a6   :  { %v3328_v61 = vsel %vm737_vm7, %v672_v43, -1e+30  ;;  %v1416_v49 = vpop.xlane.xlu1 %1415  ;;  %v3334_v15 = vsel %vm737_vm7, %v662_v2, -1e+30  ;;  %v1326_v44 = vmul.f32 %v3129_v22, %v3301_v4  ;;  %v1405_v0 = vld [vmem:[#allocation5 + $0x40] sm:$0xff] }
 0x1a7   :  { %940 = vmax.xlane.f32.xlu1 %v3268_v59  ;;  %v1319_v20 = vmul.f32 %v3068_v47, %v3334_v15  ;;  %v1426_v47 = vpop.xlane.xlu2 %1425  ;;  %v1323_v60 = vmul.f32 %v3081_v53, %v3328_v61  ;;  %v1446_v12 = vadd.f32 %v1416_v49, %v1398_v1  ;;  %1463 = vst.msk [vmem:[#allocation5 + $0x10] sm:$0xff] %vm39_vm1, %v1447_v13 }
 0x1a8   :  { %1343 = vadd.xlane.f32.xlu2 %v1322_v8  ;;  %v1403_v8 = vld [vmem:[#allocation5 + $0x30] sm:$0xff] }
 0x1a9   :  { %918 = vmax.xlane.f32.xlu0 %v3279_v24  ;;  %v1451_v2 = vadd.f32 %v1426_v47, %v1403_v8  ;;  %1462 = vst.msk [vmem:[#allocation5 + $0x8] sm:$0xff] %vm39_vm1, %v1446_v12  ;;  %v1409_v12 = vld [vmem:[#allocation5 + $0x60] sm:$0xff] }
 0x1aa   :  { %v3419_v51 = vld [vmem:[#allocation5 + $0x18] sm:$0xff] }
 0x1ab   :  { %v1424_v58 = vpop.xlane.xlu0 %1423  ;;  %1467 = vst.msk [vmem:[#allocation5 + $0x30] sm:$0xff] %vm39_vm1, %v1451_v2 }
 0x1ac   :  { %v692_v48 = vpop.f32.mrf.mxu3  ;;  %v682_v22 = vpop.f32.mrf.mxu2  ;;  %4153 = vst [vmem:[#allocation15_spill] sm:$0xff] %v3419_v51 }
 0x1ad   :  { %v3364_v11 = vsel %vm737_vm7, %v692_v48, -1e+30  ;;  %v3377_v38 = vsel %vm737_vm7, %v682_v22, -1e+30  ;;  %v674_v53 = vpop.f32.mrf.mxu1  ;;  %v664_v43 = vpop.f32.mrf.mxu0  ;;  %v1406_v48 = vld [vmem:[#allocation5 + $0x48] sm:$0xff]  ;;  %1739 = vst.msk [vmem:[%s3991_s5 + $0x18] sm:$0xff] %vm39_vm1, %v3419_v51 }
 0x1ae   :  { %v1422_v14 = vpop.xlane.xlu1 %1421  ;;  %v1327_v54 = vmul.f32 %v3191_v46, %v3377_v38  ;;  %v1402_v46 = vld [vmem:[#allocation5 + $0x28] sm:$0xff]  ;;  %v3408_v36 = vsel %vm737_vm7, %v664_v43, -1e+30  ;;  %v1408_v43 = vld [vmem:[#allocation5 + $0x58] sm:$0xff] }
 0x1af   :  { %934 = vmax.xlane.f32.xlu1 %v3301_v4  ;;  %v1449_v49 = vadd.f32 %v1422_v14, %v1401_v37  ;;  %v1432_v6 = vpop.xlane.xlu2 %1431 }
 0x1b0   :  { %942 = vmax.xlane.f32.xlu2 %v3307_v40  ;;  %v1454_v22 = vadd.f32 %v1432_v6, %v1406_v48  ;;  %v1410_v48 = vld [vmem:[#allocation5 + $0x68] sm:$0xff] }
 0x1b1   :  { %926 = vmax.xlane.f32.xlu0 %v3259_v7  ;;  %1465 = vst.msk [vmem:[#allocation5 + $0x20] sm:$0xff] %vm39_vm1, %v1449_v49 }
 0x1b2   :  { %1470 = vst.msk [vmem:[#allocation5 + $0x48] sm:$0xff] %vm39_vm1, %v1454_v22  ;;  %v3443_v31 = vld [vmem:[#allocation5 + $0x30] sm:$0xff] }
 0x1b3   :  { %v1430_v3 = vpop.xlane.xlu0 %1429  ;;  %4156 = vst [vmem:[#allocation11_spill] sm:$0xff] %v3443_v31  ;;  %v1411_v22 = vld [vmem:[#allocation5 + $0x70] sm:$0xff] }
 0x1b4   :  { %v684_v1 = vpop.f32.mrf.mxu2  ;;  %1742 = vst.msk [vmem:[%s3991_s5 + $0x30] sm:$0xff] %vm39_vm1, %v3443_v31 }
 0x1b5   :  { %v3454_v37 = vsel %vm737_vm7, %v684_v1, -1e+30 }
 0x1b6   :  { %v1428_v52 = vpop.xlane.xlu1 %1427 }
 0x1b7   :  { %928 = vmax.xlane.f32.xlu1 %v3328_v61 }
 0x1b8   :  { %920 = vmax.xlane.f32.xlu2 %v3334_v15  ;;  %v3450_v8 = vld [vmem:[#allocation5 + $0x20] sm:$0xff] }
 0x1b9   :  { %1335 = vadd.xlane.f32.xlu0 %v1318_v42  ;;  %v3402_v42 = vsel %vm737_vm7, %v674_v53, -1e+30  ;;  %v1438_v53 = vpop.xlane.xlu2 %1437  ;;  %1740 = vst.msk [vmem:[%s3991_s5 + $0x20] sm:$0xff] %vm39_vm1, %v3450_v8  ;;  %v3468_v2 = vld [vmem:[#allocation5 + $0x48] sm:$0xff] }
 0x1ba   :  { %v1324_v14 = vmul.f32 %v3163_v50, %v3402_v42  ;;  %v3427_v50 = vld [vmem:[#allocation5 + $0x8] sm:$0xff]  ;;  %4158 = vst [vmem:[#allocation26_spill] sm:$0xff] %v3468_v2  ;;  %v1457_v49 = vadd.f32 %v1438_v53, %v1409_v12 }
 0x1bb   :  { %4154 = vst [vmem:[#allocation10_spill] sm:$0xff] %v3427_v50 }
 0x1bc   :  { %1737 = vst.msk [vmem:[%s3991_s5 + $0x8] sm:$0xff] %vm39_vm1, %v3427_v50 }
 0x1bd   :  { %1745 = vst.msk [vmem:[%s3991_s5 + $0x48] sm:$0xff] %vm39_vm1, %v3468_v2 }
 0x1be   :  { %1473 = vst.msk [vmem:[#allocation5 + $0x60] sm:$0xff] %vm39_vm1, %v1457_v49 }
 0x1bf   :  { %1351 = vadd.xlane.f32.xlu1 %v1326_v44  ;;  %v1404_v44 = vld [vmem:[#allocation5 + $0x38] sm:$0xff] }
 0x1c0   :  { %1337 = vadd.xlane.f32.xlu2 %v1319_v20  ;;  %v1450_v20 = vadd.f32 %v1424_v58, %v1402_v46  ;;  %v1452_v47 = vadd.f32 %v1428_v52, %v1404_v44  ;;  %v1436_v58 = vpop.xlane.xlu0 %1435  ;;  %v3434_v52 = vld [vmem:[#allocation5 + $0x10] sm:$0xff]  ;;  %v1453_v46 = vadd.f32 %v1430_v3, %v1405_v0 }
 0x1c1   :  { %944 = vmax.xlane.f32.xlu0 %v3364_v11  ;;  %4155 = vst [vmem:[#allocation9_spill] sm:$0xff] %v3434_v52 }
 0x1c2   :  { %1466 = vst.msk [vmem:[#allocation5 + $0x28] sm:$0xff] %vm39_vm1, %v1450_v20 }
 0x1c3   :  { %1468 = vst.msk [vmem:[#allocation5 + $0x38] sm:$0xff] %vm39_vm1, %v1452_v47  ;;  %v1456_v47 = vadd.f32 %v1436_v58, %v1408_v43 }
 0x1c4   :  { %1738 = vst.msk [vmem:[%s3991_s5 + $0x10] sm:$0xff] %vm39_vm1, %v3434_v52  ;;  %v1302_v52 = vld [vmem:[#allocation4 + $0x8] sm:$0xff] }
 0x1c5   :  { %1469 = vst.msk [vmem:[#allocation5 + $0x40] sm:$0xff] %vm39_vm1, %v1453_v46  ;;  %v3503_v53 = vld [vmem:[#allocation5 + $0x60] sm:$0xff] }
 0x1c6   :  { %1472 = vst.msk [vmem:[#allocation5 + $0x58] sm:$0xff] %vm39_vm1, %v1456_v47 }
 0x1c7   :  { %1345 = vadd.xlane.f32.xlu1 %v1323_v60  ;;  %v1434_v60 = vpop.xlane.xlu1 %1433  ;;  %4161 = vst [vmem:[#allocation25_spill] sm:$0xff] %v3503_v53 }
 0x1c8   :  { %936 = vmax.xlane.f32.xlu2 %v3377_v38  ;;  %v1442_v20 = vpop.xlane.xlu0 %1441  ;;  %1748 = vst.msk [vmem:[%s3991_s5 + $0x60] sm:$0xff] %vm39_vm1, %v3503_v53 }
 0x1c9   :  { %1353 = vadd.xlane.f32.xlu0 %v1327_v54  ;;  %v1320_v54 = vmul.f32 %v2992_v18, %v3408_v36  ;;  %v1407_v18 = vld [vmem:[#allocation5 + $0x50] sm:$0xff]  ;;  %v3461_v13 = vld [vmem:[#allocation5 + $0x28] sm:$0xff]  ;;  %v1459_v0 = vadd.f32 %v1442_v20, %v1411_v22  ;;  %v1305_v20 = vld [vmem:[#allocation4 + $0x20] sm:$0xff] }
 0x1ca   :  { %4157 = vst [vmem:[#allocation12_spill] sm:$0xff] %v3461_v13  ;;  %v3476_v3 = vld [vmem:[#allocation5 + $0x38] sm:$0xff]  ;;  %v1455_v44 = vadd.f32 %v1434_v60, %v1407_v18  ;;  %v2057_v60 = vmov -1e+30  }
 0x1cb   :  { %1741 = vst.msk [vmem:[%s3991_s5 + $0x28] sm:$0xff] %vm39_vm1, %v3461_v13 }
 0x1cc   :  { %4159 = vst [vmem:[#allocation17_spill] sm:$0xff] %v3476_v3  ;;  %v3495_v58 = vld [vmem:[#allocation5 + $0x40] sm:$0xff] }
 0x1cd   :  { %1743 = vst.msk [vmem:[%s3991_s5 + $0x38] sm:$0xff] %vm39_vm1, %v3476_v3  ;;  %v3517_v18 = vld [vmem:[#allocation5 + $0x58] sm:$0xff] }
 0x1ce   :  { %1471 = vst.msk [vmem:[#allocation5 + $0x50] sm:$0xff] %vm39_vm1, %v1455_v44 }
 0x1cf   :  { %922 = vmax.xlane.f32.xlu1 %v3408_v36  ;;  %v1440_v6 = vpop.xlane.xlu1 %1439  ;;  %1475 = vst.msk [vmem:[#allocation5 + $0x70] sm:$0xff] %vm39_vm1, %v1459_v0 }
 0x1d0   :  { %930 = vmax.xlane.f32.xlu2 %v3402_v42  ;;  %v1458_v1 = vadd.f32 %v1440_v6, %v1410_v48  ;;  %44 = vst.msk [vmem:[#allocation2 + $0x20] sm:$0xff] %vm39_vm1, %v2057_v60 }
 0x1d1   :  { %1347 = vadd.xlane.f32.xlu0 %v1324_v14  ;;  %v694_v14 = vpop.f32.mrf.mxu3  ;;  %4160 = vst [vmem:[#allocation13_spill] sm:$0xff] %v3495_v58 }
 0x1d2   :  { %1474 = vst.msk [vmem:[#allocation5 + $0x68] sm:$0xff] %vm39_vm1, %v1458_v1 }
 0x1d3   :  { %40 = vst.msk [vmem:[#allocation2] sm:$0xff] %vm39_vm1, %v2057_v60 }
 0x1d4   :  { %1744 = vst.msk [vmem:[%s3991_s5 + $0x40] sm:$0xff] %vm39_vm1, %v3495_v58 }
 0x1d5   :  { %v3510_v12 = vld [vmem:[#allocation5 + $0x50] sm:$0xff]  ;;  %4163 = vst [vmem:[#allocation16_spill] sm:$0xff] %v3517_v18 }
 0x1d6   :  { %4162 = vst [vmem:[#allocation27_spill] sm:$0xff] %v3510_v12  ;;  %v3531_v43 = vld [vmem:[#allocation5 + $0x70] sm:$0xff] }
 0x1d7   :  { %1339 = vadd.xlane.f32.xlu1 %v1320_v54  ;;  %v3487_v54 = vsel %vm737_vm7, %v694_v14, -1e+30  ;;  %1746 = vst.msk [vmem:[%s3991_s5 + $0x50] sm:$0xff] %vm39_vm1, %v3510_v12  ;;  %v3552_v49 = vld [vmem:[#allocation2 + $0x20] sm:$0xff] }
 0x1d8   :  { %1747 = vst.msk [vmem:[%s3991_s5 + $0x58] sm:$0xff] %vm39_vm1, %v3517_v18 }
 0x1d9   :  { %938 = vmax.xlane.f32.xlu0 %v3454_v37  ;;  %v3524_v46 = vld [vmem:[#allocation5 + $0x68] sm:$0xff]  ;;  %4165 = vst [vmem:[#allocation24_spill] sm:$0xff] %v3531_v43 }
 0x1da   :  { %4164 = vst [vmem:[#allocation14_spill] sm:$0xff] %v3524_v46  ;;  %v3554_v6 = vld [vmem:[#allocation2] sm:$0xff] }
 0x1db   :  { %1749 = vst.msk [vmem:[%s3991_s5 + $0x68] sm:$0xff] %vm39_vm1, %v3524_v46 }
 0x1dc   :  { %1750 = vst.msk [vmem:[%s3991_s5 + $0x70] sm:$0xff] %vm39_vm1, %v3531_v43 }
 0x1dd   :  { %41 = vst.msk [vmem:[#allocation2 + $0x8] sm:$0xff] %vm39_vm1, %v2057_v60 }
 0x1de   :  { %42 = vst.msk [vmem:[#allocation2 + $0x10] sm:$0xff] %vm39_vm1, %v2057_v60 }
 0x1df   :  { %946 = vmax.xlane.f32.xlu1 %v3487_v54  ;;  %43 = vst.msk [vmem:[#allocation2 + $0x18] sm:$0xff] %vm39_vm1, %v2057_v60 }
 0x1e0   :  { %45 = vst.msk [vmem:[#allocation2 + $0x28] sm:$0xff] %vm39_vm1, %v2057_v60 }
 0x1e1   :  { %46 = vst.msk [vmem:[#allocation2 + $0x30] sm:$0xff] %vm39_vm1, %v2057_v60 }
 0x1e2   :  { %47 = vst.msk [vmem:[#allocation2 + $0x38] sm:$0xff] %vm39_vm1, %v2057_v60 }
 0x1e3   :  { %48 = vst.msk [vmem:[#allocation2 + $0x40] sm:$0xff] %vm39_vm1, %v2057_v60 }
 0x1e4   :  { %49 = vst.msk [vmem:[#allocation2 + $0x48] sm:$0xff] %vm39_vm1, %v2057_v60 }
 0x1e5   :  { %50 = vst.msk [vmem:[#allocation2 + $0x50] sm:$0xff] %vm39_vm1, %v2057_v60 }
 0x1e6   :  { %51 = vst.msk [vmem:[#allocation2 + $0x58] sm:$0xff] %vm39_vm1, %v2057_v60 }
 0x1e7   :  { %52 = vst.msk [vmem:[#allocation2 + $0x60] sm:$0xff] %vm39_vm1, %v2057_v60  ;;  %v3609_v43 = vld [vmem:[#allocation2 + $0x28] sm:$0xff] }
 0x1e8   :  { %53 = vst.msk [vmem:[#allocation2 + $0x68] sm:$0xff] %vm39_vm1, %v2057_v60 }
 0x1e9   :  { %54 = vst.msk [vmem:[#allocation2 + $0x70] sm:$0xff] %vm39_vm1, %v2057_v60 }
 0x1ea   :  { %55 = vst.msk [vmem:[#allocation2 + $0x78] sm:$0xff] %vm39_vm1, %v2057_v60  ;;  %v3572_v46 = vld [vmem:[#allocation2 + $0x40] sm:$0xff] }
 0x20a   :  { %v925_v48 = vpop.xlane.xlu2 %924  ;;  %v917_v44 = vpop.xlane.xlu1 %916 }
 0x20b   :  { %v3557_v22 = vmax.f32 %v3552_v49, %v925_v48  ;;  %v3560_v14 = vmax.f32 %v3554_v6, %v917_v44  ;;  %v1301_v48 = vld [vmem:[#allocation4] sm:$0xff] }
 0x20c   :  { %v1342_v47 = vpop.xlane.xlu0 %1341  ;;  %v1309_v44 = vld [vmem:[#allocation4 + $0x40] sm:$0xff] }
 0x20d   :  { %1481 = vst.msk [vmem:[#allocation2 + $0x20] sm:$0xff] %vm39_vm1, %v3557_v22  ;;  %v1369_v60 = vadd.f32 %v1342_v47, %v1305_v20  ;;  %1030 = vperm.xlu2 %1823, %v3560_v14  }
 0x20e   :  { %1477 = vst.msk [vmem:[#allocation2] sm:$0xff] %vm39_vm1, %v3560_v14 }
 0x20f   :  { %1385 = vst.msk [vmem:[#allocation4 + $0x20] sm:$0xff] %vm39_vm1, %v1369_v60 }
 0x212   :  { %v1334_v25 = vpop.xlane.xlu1 %1333 }
 0x213   :  { %v1365_v1 = vadd.f32 %v1334_v25, %v1301_v48  ;;  %v1350_v18 = vpop.xlane.xlu2 %1349  ;;  %v3585_v25 = vld [vmem:[#allocation2 + $0x60] sm:$0xff] }
 0x214   :  { %v1373_v53 = vadd.f32 %v1350_v18, %v1309_v44  ;;  %v933_v51 = vpop.xlane.xlu0 %932  ;;  %v1306_v18 = vld [vmem:[#allocation4 + $0x28] sm:$0xff] }
 0x215   :  { %1381 = vst.msk [vmem:[#allocation4] sm:$0xff] %vm39_vm1, %v1365_v1  ;;  %v3576_v20 = vmax.f32 %v3572_v46, %v933_v51  ;;  %1050 = vperm.xlu2 %1823, %v3557_v22   ;;  %v3587_v1 = vld [vmem:[#allocation2 + $0x8] sm:$0xff] }
 0x216   :  { %1389 = vst.msk [vmem:[#allocation4 + $0x40] sm:$0xff] %vm39_vm1, %v1373_v53 }
 0x217   :  { %1485 = vst.msk [vmem:[#allocation2 + $0x40] sm:$0xff] %vm39_vm1, %v3576_v20  ;;  %1070 = vperm.xlu1 %1825, %v3576_v20  }
 0x21a   :  { %v941_v60 = vpop.xlane.xlu1 %940 }
 0x21b   :  { %v3590_v51 = vmax.f32 %v3585_v25, %v941_v60  ;;  %v1344_v48 = vpop.xlane.xlu2 %1343  ;;  %v3637_v60 = vld [vmem:[#allocation2 + $0x10] sm:$0xff] }
 0x21c   :  { %v1370_v44 = vadd.f32 %v1344_v48, %v1306_v18  ;;  %v919_v53 = vpop.xlane.xlu0 %918  ;;  %v3605_v18 = vld [vmem:[#allocation2 + $0x48] sm:$0xff] }
 0x21d   :  { %1489 = vst.msk [vmem:[#allocation2 + $0x60] sm:$0xff] %vm39_vm1, %v3590_v51  ;;  %v3597_v0 = vmax.f32 %v3587_v1, %v919_v53  ;;  %1090 = vperm.xlu0 %1824, %v3590_v51   ;;  %v3607_v48 = vld [vmem:[#allocation2 + $0x68] sm:$0xff] }
 0x21e   :  { %1386 = vst.msk [vmem:[#allocation4 + $0x28] sm:$0xff] %vm39_vm1, %v1370_v44 }
 0x21f   :  { %1478 = vst.msk [vmem:[#allocation2 + $0x8] sm:$0xff] %vm39_vm1, %v3597_v0 }
 0x220   :  { %4166 = vst [vmem:[#allocation20_spill] sm:$0xff] %v3605_v18 }
 0x221   :  { %4167 = vst [vmem:[#allocation19_spill] sm:$0xff] %v3607_v48 }
 0x222   :  { %v935_v47 = vpop.xlane.xlu1 %934 }
 0x223   :  { %v3612_v53 = vmax.f32 %v3605_v18, %v935_v47  ;;  %v943_v3 = vpop.xlane.xlu2 %942 }
 0x224   :  { %v3615_v12 = vmax.f32 %v3607_v48, %v943_v3  ;;  %v927_v44 = vpop.xlane.xlu0 %926  ;;  %v3656_v3 = vld [vmem:[#allocation2 + $0x70] sm:$0xff] }
 0x225   :  { %1486 = vst.msk [vmem:[#allocation2 + $0x48] sm:$0xff] %vm39_vm1, %v3612_v53  ;;  %v3622_v31 = vmax.f32 %v3609_v43, %v927_v44  ;;  %1035 = vperm.xlu0 %1824, %v3597_v0   ;;  %v3635_v44 = vld [vmem:[#allocation2 + $0x30] sm:$0xff] }
 0x226   :  { %4168 = vst [vmem:[#allocation18_spill] sm:$0xff] %v3615_v12  ;;  %1095 = vperm.xlu2 %1823, %v3615_v12  }
 0x227   :  { %4169 = vst [vmem:[#allocation21_spill] sm:$0xff] %v3622_v31  ;;  %1055 = vperm.xlu1 %1825, %v3622_v31  }
 0x228   :  { %1490 = vst.msk [vmem:[#allocation2 + $0x68] sm:$0xff] %vm39_vm1, %v3615_v12 }
 0x229   :  { %1482 = vst.msk [vmem:[#allocation2 + $0x28] sm:$0xff] %vm39_vm1, %v3622_v31 }
 0x22a   :  { %4170 = vst [vmem:[#allocation23_spill] sm:$0xff] %v3635_v44  ;;  %v929_v2 = vpop.xlane.xlu1 %928 }
 0x22b   :  { %v3640_v47 = vmax.f32 %v3635_v44, %v929_v2  ;;  %v921_v13 = vpop.xlane.xlu2 %920  ;;  %v1303_v2 = vld [vmem:[#allocation4 + $0x10] sm:$0xff]  ;;  %4173 = vst [vmem:[#allocation29_spill] sm:$0xff] %v3656_v3 }
 0x22c   :  { %v3643_v50 = vmax.f32 %v3637_v60, %v921_v13  ;;  %v1336_v58 = vpop.xlane.xlu0 %1335  ;;  %v1310_v13 = vld [vmem:[#allocation4 + $0x48] sm:$0xff] }
 0x22d   :  { %4171 = vst [vmem:[#allocation22_spill] sm:$0xff] %v3640_v47  ;;  %v1366_v12 = vadd.f32 %v1336_v58, %v1302_v52  ;;  %1075 = vperm.xlu0 %1824, %v3612_v53  }
 0x22e   :  { %4172 = vst [vmem:[#allocation28_spill] sm:$0xff] %v3643_v50 }
 0x22f   :  { %1483 = vst.msk [vmem:[#allocation2 + $0x30] sm:$0xff] %vm39_vm1, %v3640_v47  ;;  %1040 = vperm.xlu1 %1825, %v3643_v50  }
 0x230   :  { %1479 = vst.msk [vmem:[#allocation2 + $0x10] sm:$0xff] %vm39_vm1, %v3643_v50 }
 0x231   :  { %1382 = vst.msk [vmem:[#allocation4 + $0x8] sm:$0xff] %vm39_vm1, %v1366_v12 }
 0x232   :  { %v1352_v18 = vpop.xlane.xlu1 %1351 }
 0x233   :  { %v1374_v44 = vadd.f32 %v1352_v18, %v1310_v13  ;;  %v1338_v31 = vpop.xlane.xlu2 %1337  ;;  %v1307_v18 = vld [vmem:[#allocation4 + $0x30] sm:$0xff] }
 0x234   :  { %v1367_v52 = vadd.f32 %v1338_v31, %v1303_v2  ;;  %v945_v58 = vpop.xlane.xlu0 %944  ;;  %v3669_v31 = vld [vmem:[#allocation2 + $0x50] sm:$0xff] }
 0x235   :  { %1390 = vst.msk [vmem:[#allocation4 + $0x48] sm:$0xff] %vm39_vm1, %v1374_v44  ;;  %v3660_v48 = vmax.f32 %v3656_v3, %v945_v58  ;;  %1060 = vperm.xlu0 %1824, %v3640_v47   ;;  %v1311_v44 = vld [vmem:[#allocation4 + $0x50] sm:$0xff] }
 0x236   :  { %1383 = vst.msk [vmem:[#allocation4 + $0x10] sm:$0xff] %vm39_vm1, %v1367_v52 }
 0x237   :  { %4174 = vst [vmem:[#allocation30_spill] sm:$0xff] %v3660_v48  ;;  %1100 = vperm.xlu1 %1825, %v3660_v48  }
 0x238   :  { %1491 = vst.msk [vmem:[#allocation2 + $0x70] sm:$0xff] %vm39_vm1, %v3660_v48  ;;  %v3681_v48 = vld [vmem:[#allocation2 + $0x18] sm:$0xff] }
 0x239   :  { %4175 = vst [vmem:[#allocation31_spill] sm:$0xff] %v3669_v31 }
 0x23a   :  { %v1346_v13 = vpop.xlane.xlu1 %1345  ;;  %4177 = vst [vmem:[#allocation33_spill] sm:$0xff] %v3681_v48 }
 0x23b   :  { %v1371_v2 = vadd.f32 %v1346_v13, %v1307_v18  ;;  %v937_v58 = vpop.xlane.xlu2 %936  ;;  %v3683_v18 = vld [vmem:[#allocation2 + $0x38] sm:$0xff] }
 0x23c   :  { %v3672_v50 = vmax.f32 %v3669_v31, %v937_v58  ;;  %v1354_v47 = vpop.xlane.xlu0 %1353  ;;  %4178 = vst [vmem:[#allocation34_spill] sm:$0xff] %v3683_v18  ;;  %v1308_v58 = vld [vmem:[#allocation4 + $0x38] sm:$0xff] }
 0x23d   :  { %1387 = vst.msk [vmem:[#allocation4 + $0x30] sm:$0xff] %vm39_vm1, %v1371_v2  ;;  %v1375_v52 = vadd.f32 %v1354_v47, %v1311_v44  ;;  %v3702_v31 = vld [vmem:[#allocation2 + $0x58] sm:$0xff] }
 0x23e   :  { %4176 = vst [vmem:[#allocation32_spill] sm:$0xff] %v3672_v50  ;;  %1080 = vperm.xlu2 %1823, %v3672_v50  }
 0x23f   :  { %1487 = vst.msk [vmem:[#allocation2 + $0x50] sm:$0xff] %vm39_vm1, %v3672_v50 }
 0x240   :  { %1391 = vst.msk [vmem:[#allocation4 + $0x50] sm:$0xff] %vm39_vm1, %v1375_v52 }
 0x241   :  { %4181 = vst [vmem:[#allocation37_spill] sm:$0xff] %v3702_v31 }
 0x242   :  { %v923_v13 = vpop.xlane.xlu1 %922 }
 0x243   :  { %v3686_v3 = vmax.f32 %v3681_v48, %v923_v13  ;;  %v931_v47 = vpop.xlane.xlu2 %930  ;;  %v1304_v13 = vld [vmem:[#allocation4 + $0x18] sm:$0xff] }
 0x244   :  { %v3689_v44 = vmax.f32 %v3683_v18, %v931_v47  ;;  %v1348_v2 = vpop.xlane.xlu0 %1347 }
 0x245   :  { %4179 = vst [vmem:[#allocation35_spill] sm:$0xff] %v3686_v3  ;;  %v1372_v52 = vadd.f32 %v1348_v2, %v1308_v58  ;;  %1045 = vperm.xlu0 %1824, %v3686_v3  }
 0x246   :  { %4180 = vst [vmem:[#allocation36_spill] sm:$0xff] %v3689_v44  ;;  %1065 = vperm.xlu2 %1823, %v3689_v44  }
 0x247   :  { %1480 = vst.msk [vmem:[#allocation2 + $0x18] sm:$0xff] %vm39_vm1, %v3686_v3 }
 0x248   :  { %1484 = vst.msk [vmem:[#allocation2 + $0x38] sm:$0xff] %vm39_vm1, %v3689_v44 }
 0x249   :  { %1388 = vst.msk [vmem:[#allocation4 + $0x38] sm:$0xff] %vm39_vm1, %v1372_v52  ;;  %v3713_v52 = vld [vmem:[#allocation2 + $0x78] sm:$0xff] }
 0x24a   :  { %v1340_v47 = vpop.xlane.xlu1 %1339  ;;  %4183 = vst [vmem:[#allocation39_spill] sm:$0xff] %v3713_v52 }
 0x24b   :  { %v1368_v12 = vadd.f32 %v1340_v47, %v1304_v13 }
 0x24c   :  { %v939_v48 = vpop.xlane.xlu0 %938 }
 0x24d   :  { %1384 = vst.msk [vmem:[#allocation4 + $0x18] sm:$0xff] %vm39_vm1, %v1368_v12  ;;  %v3706_v58 = vmax.f32 %v3702_v31, %v939_v48  ;;  %v4185_v31 = vmov 0.0  }
 0x24e   :  { %v1778_v35 = vsel %vm739_vm8, 1.0, %v4185_v31  ;;  %vm4187_vm8 = vcmp.ne.s32.totalorder %v3060_v33, %v2944_v23 }
 0x24f   :  { %4182 = vst [vmem:[#allocation38_spill] sm:$0xff] %v3706_v58  ;;  %1085 = vperm.xlu1 %1825, %v3706_v58  }
 0x250   :  { %1488 = vst.msk [vmem:[#allocation2 + $0x58] sm:$0xff] %vm39_vm1, %v3706_v58 }
 0x252   :  { %v947_v50 = vpop.xlane.xlu1 %946 }
 0x253   :  { %v3716_v3 = vmax.f32 %v3713_v52, %v947_v50  ;;  %v1777_v50 = vsel %vm738_vm10, 1.0, %v4185_v31  ;;  %vm4186_vm10 = vcmp.ne.s32.totalorder %v3038_v19, %v2944_v23  ;;  %v1786_v19 = vsel %vm4187_vm8, 1.0, %v4185_v31 }
 0x255   :  { %4184 = vst [vmem:[#allocation40_spill] sm:$0xff] %v3716_v3  ;;  %1105 = vperm.xlu0 %1824, %v3716_v3  }
 0x256   :  { %1492 = vst.msk [vmem:[#allocation2 + $0x78] sm:$0xff] %vm39_vm1, %v3716_v3 }
 0x267   :  { %v1031_v48 = vpop.permute.xlu2 %1030 }
 0x268   :  { %v1108_v13 = vsub.f32 %v3219_v28, %v1031_v48  ;;  %v1781_v28 = vsel %vm742_vm15, 1.0, %v4185_v31  ;;  %vm4188_vm15 = vcmp.ne.s32.totalorder %v2996_v30, %v2944_v23 }
 0x26a   :  { %v1124_v47 = vmul.f32 1.442695, %v1108_v13 }
 0x26c   :  { %1891 = vpow2.f32 %v1124_v47 }
 0x26f   :  { %v1051_v2 = vpop.permute.xlu2 %1050 }
 0x270   :  { %v1112_v58 = vsub.f32 %v3223_v10, %v1051_v2 }
 0x272   :  { %v1892_v44 = vpop.eup %1891  ;;  %v1132_v12 = vmul.f32 1.442695, %v1112_v58 }
 0x273   :  { %v1188_v52 = vmul.f32 %v1892_v44, %v1777_v50  ;;  %v1785_v44 = vsel %vm746_vm0, 1.0, %v4185_v31  ;;  %vm4189_vm0 = vcmp.ne.s32.totalorder %v3002_v62, %v2944_v23 }
 0x274   :  { %1893 = vpow2.f32 %v1132_v12 }
 0x275   :  { %1236 = vadd.xlane.f32.xlu2 %v1188_v52 }
 0x27a   :  { %v1894_v48 = vpop.eup %1893 }
 0x27b   :  { %v1192_v13 = vmul.f32 %v1894_v48, %v1781_v28 }
 0x27d   :  { %1244 = vadd.xlane.f32.xlu1 %v1192_v13 }
 0x280   :  { %v1096_v55 = vpop.permute.xlu2 %1095 }
 0x289   :  { %v1071_v47 = vpop.permute.xlu1 %1070 }
 0x28a   :  { %v1116_v10 = vsub.f32 %v3239_v27, %v1071_v47  ;;  %v1789_v27 = vsel %vm750_vm12, 1.0, %v4185_v31  ;;  %vm4190_vm12 = vcmp.ne.s32.totalorder %v3101_v17, %v2944_v23 }
 0x28b   :  { %v1784_v45 = vsel %vm4190_vm12, 1.0, %v4185_v31 }
 0x28c   :  { %v1140_v2 = vmul.f32 1.442695, %v1116_v10 }
 0x28e   :  { %1895 = vpow2.f32 %v1140_v2 }
 0x28f   :  { %v1091_v3 = vpop.permute.xlu0 %1090 }
 0x290   :  { %v1120_v18 = vsub.f32 %v3268_v59, %v1091_v3  ;;  %v1121_v3 = vsub.f32 %v3307_v40, %v1096_v55  ;;  %v4193_v59 = vsub.f32 %v3552_v49, %v3557_v22 }
 0x292   :  { %v1148_v58 = vmul.f32 1.442695, %v1120_v18  ;;  %v1150_v2 = vmul.f32 1.442695, %v1121_v3 }
 0x294   :  { %v1896_v52 = vpop.eup %1895  ;;  %1897 = vpow2.f32 %v1148_v58 }
 0x295   :  { %v1196_v12 = vmul.f32 %v1896_v52, %v1785_v44 }
 0x297   :  { %1252 = vadd.xlane.f32.xlu0 %v1196_v12  ;;  %v1036_v50 = vpop.permute.xlu0 %1035 }
 0x298   :  { %v1109_v28 = vsub.f32 %v3279_v24, %v1036_v50  ;;  %v1081_v58 = vpop.permute.xlu2 %1080 }
 0x299   :  { %v1056_v18 = vpop.permute.xlu1 %1055 }
 0x29a   :  { %v1898_v48 = vpop.eup %1897  ;;  %v1126_v13 = vmul.f32 1.442695, %v1109_v28  ;;  %v1113_v63 = vsub.f32 %v3259_v7, %v1056_v18  ;;  %v1118_v7 = vsub.f32 %v3377_v38, %v1081_v58  ;;  %v1782_v28 = vsel %vm4186_vm10, 1.0, %v4185_v31 }
 0x29b   :  { %v1200_v47 = vmul.f32 %v1898_v48, %v1789_v27 }
 0x29c   :  { %1899 = vpow2.f32 %v1126_v13  ;;  %v1134_v10 = vmul.f32 1.442695, %v1113_v63  ;;  %v1144_v18 = vmul.f32 1.442695, %v1118_v7  ;;  %v1787_v7 = vsel %vm748_vm11, 1.0, %v4185_v31 }
 0x29d   :  { %1260 = vadd.xlane.f32.xlu2 %v1200_v47  ;;  %vm4191_vm11 = vcmp.ne.s32.totalorder %v2964_v39, %v2944_v23  ;;  %v1788_v39 = vsel %vm749_vm3, 1.0, %v4185_v31 }
 0x29e   :  { %1901 = vpow2.f32 %v1134_v10  ;;  %v1779_v10 = vsel %vm4188_vm15, 1.0, %v4185_v31  ;;  %v1780_v16 = vsel %vm4191_vm11, 1.0, %v4185_v31 }
 0x29f   :  { %v1076_v24 = vpop.permute.xlu0 %1075  ;;  %1903 = vpow2.f32 %v1150_v2 }
 0x2a0   :  { %v1117_v44 = vsub.f32 %v3301_v4, %v1076_v24  ;;  %v1066_v13 = vpop.permute.xlu2 %1065 }
 0x2a1   :  { %v1041_v52 = vpop.permute.xlu1 %1040 }
 0x2a2   :  { %v1900_v55 = vpop.eup %1899  ;;  %v1142_v12 = vmul.f32 1.442695, %v1117_v44  ;;  %v1110_v50 = vsub.f32 %v3334_v15, %v1041_v52  ;;  %v1790_v15 = vsel %vm751_vm6, 1.0, %v4185_v31 }
 0x2a3   :  { %v1189_v27 = vmul.f32 %v1900_v55, %v1778_v35 }
 0x2a4   :  { %v1902_v4 = vpop.eup %1901  ;;  %1905 = vpow2.f32 %v1142_v12  ;;  %v1128_v3 = vmul.f32 1.442695, %v1110_v50  ;;  %v1791_v50 = vsel %vm752_vm9, 1.0, %v4185_v31 }
 0x2a5   :  { %1238 = vadd.xlane.f32.xlu1 %v1189_v27  ;;  %v1193_v41 = vmul.f32 %v1902_v4, %v1782_v28  ;;  %v1904_v48 = vpop.eup %1903 }
 0x2a6   :  { %1907 = vpow2.f32 %v1128_v3  ;;  %v1201_v44 = vmul.f32 %v1904_v48, %v1790_v15 }
 0x2a7   :  { %1246 = vadd.xlane.f32.xlu0 %v1193_v41  ;;  %v1061_v38 = vpop.permute.xlu0 %1060  ;;  %1909 = vpow2.f32 %v1144_v18 }
 0x2a8   :  { %v1114_v63 = vsub.f32 %v3328_v61, %v1061_v38  ;;  %v1115_v61 = vsub.f32 %v3402_v42, %v1066_v13  ;;  %v1783_v42 = vsel %vm4189_vm0, 1.0, %v4185_v31 }
 0x2a9   :  { %v1101_v47 = vpop.permute.xlu1 %1100 }
 0x2aa   :  { %v1906_v2 = vpop.eup %1905  ;;  %v1136_v58 = vmul.f32 1.442695, %v1114_v63  ;;  %v1122_v24 = vsub.f32 %v3364_v11, %v1101_v47  ;;  %v1138_v55 = vmul.f32 1.442695, %v1115_v61  ;;  %v1331_v61 = vmul.f32 %v3210_v57, %v3364_v11  ;;  %v2025_v57 = vld [vmem:[%s3987_s1] ss:$0 sm:$0xff] }
 0x2ab   :  { %v1197_v33 = vmul.f32 %v1906_v2, %v1786_v19  ;;  %vm867_vm3 = vcmp.eq.s32.totalorder %v3229_v5, %v2025_v57  ;;  %v1004_v5 = vmul.f32 1.442695, %v4193_v59  ;;  %v1216_v57 = vld [vmem:[#allocation3 + $0x60] sm:$0xff]  ;;  %v4202_v59 = vld [vmem:[#allocation18_spill] sm:$0xff] }
 0x2ac   :  { %v1908_v35 = vpop.eup %1907  ;;  %1911 = vpow2.f32 %v1136_v58  ;;  %v1152_v52 = vmul.f32 1.442695, %v1122_v24  ;;  %v714_v58 = vadd.s32 120, %v2942_v32  ;;  %v4192_v32 = vsub.f32 %v3554_v6, %v3560_v14 }
 0x2ad   :  { %1254 = vadd.xlane.f32.xlu2 %v1197_v33  ;;  %1262 = vadd.xlane.f32.xlu1 %v1201_v44  ;;  %v1190_v9 = vmul.f32 %v1908_v35, %v1779_v10  ;;  %v1910_v30 = vpop.eup %1909 }
 0x2ae   :  { %1913 = vpow2.f32 %v1152_v52  ;;  %v1198_v27 = vmul.f32 %v1910_v30, %v1787_v7  ;;  %vm753_vm9 = vcmp.ne.s32.totalorder %v714_v58, %v2944_v23  ;;  %v996_v11 = vmul.f32 1.442695, %v4192_v32 }
 0x2af   :  { %1240 = vadd.xlane.f32.xlu0 %v1190_v9  ;;  %1915 = vpow2.f32 %v1138_v55  ;;  %vm769_vm2 = vmand %vm753_vm9, %vm737_vm7  ;;  %v1330_v23 = vmul.f32 %v3213_v56, %v3307_v40  ;;  %v1204_v9 = vld [vmem:[#allocation3] sm:$0xff]  ;;  %v1608_v56 = vmax.f32 %v3288_v26, 1e-08 }
 0x2b0   :  { %vm883_vm6 = vmand %vm867_vm3, %vm769_vm2 }
 0x2b1   :  { %v1776_v35 = vsel %vm883_vm6, 1.0, %v4185_v31 }
 0x2b2   :  { %v1912_v12 = vpop.eup %1911  ;;  %v1332_v34 = vmul.f32 %v1776_v35, %v3487_v54 }
 0x2b3   :  { %v1194_v28 = vmul.f32 %v1912_v12, %v1783_v42 }
 0x2b4   :  { %v1914_v4 = vpop.eup %1913 }
 0x2b5   :  { %1248 = vadd.xlane.f32.xlu2 %v1194_v28  ;;  %1256 = vadd.xlane.f32.xlu1 %v1198_v27  ;;  %v1202_v3 = vmul.f32 %v1914_v4, %v1791_v50  ;;  %v1916_v41 = vpop.eup %1915  ;;  %v4194_v28 = vsub.f32 %v3572_v46, %v3576_v20  ;;  %v1516_v20 = vld [vmem:[#allocation2 + $0x20] sm:$0xff] }
 0x2b6   :  { %v1195_v13 = vmul.f32 %v1916_v41, %v1784_v45  ;;  %v1640_v45 = vld [vmem:[#allocation4] sm:$0xff] }
 0x2b7   :  { %1264 = vadd.xlane.f32.xlu0 %v1202_v3  ;;  %v1046_v62 = vpop.permute.xlu0 %1045  ;;  %v1012_v27 = vmul.f32 1.442695, %v4194_v28  ;;  %v1512_v3 = vld [vmem:[#allocation2] sm:$0xff]  ;;  %v4209_v28 = vld [vmem:[#allocation31_spill] sm:$0xff] }
 0x2b8   :  { %v1111_v18 = vsub.f32 %v3408_v36, %v1046_v62  ;;  %v1328_v36 = vmul.f32 %v3188_v29, %v3454_v37 }
 0x2ba   :  { %v1130_v48 = vmul.f32 1.442695, %v1111_v18  ;;  %v1612_v18 = vmax.f32 %v3450_v8, 1e-08 }
 0x2bc   :  { %1917 = vpow2.f32 %v1130_v48 }
 0x2bd   :  { %1250 = vadd.xlane.f32.xlu1 %v1195_v13  ;;  %v4195_v13 = vsub.f32 %v3585_v25, %v3590_v51  ;;  %v1644_v25 = vld [vmem:[#allocation4 + $0x20] sm:$0xff] }
 0x2c1   :  { %v1086_v38 = vpop.permute.xlu1 %1085 }
 0x2c2   :  { %v1918_v63 = vpop.eup %1917  ;;  %v1119_v19 = vsub.f32 %v3454_v37, %v1086_v38  ;;  %v1792_v37 = vsel %vm753_vm9, 1.0, %v4185_v31 }
 0x2c3   :  { %v1191_v15 = vmul.f32 %v1918_v63, %v1780_v16  ;;  %v1020_v16 = vmul.f32 1.442695, %v4195_v13  ;;  %v4213_v13 = vld [vmem:[#allocation29_spill] sm:$0xff] }
 0x2c4   :  { %v1146_v47 = vmul.f32 1.442695, %v1119_v19 }
 0x2c5   :  { %1242 = vadd.xlane.f32.xlu2 %v1191_v15  ;;  %1355 = vadd.xlane.f32.xlu1 %v1328_v36 }
 0x2c6   :  { %1919 = vpow2.f32 %v1146_v47 }
 0x2c7   :  { %v1106_v17 = vpop.permute.xlu0 %1105 }
 0x2c8   :  { %v1123_v10 = vsub.f32 %v3487_v54, %v1106_v17  ;;  %v1208_v54 = vld [vmem:[#allocation3 + $0x20] sm:$0xff] }
 0x2c9   :  { %v1212_v17 = vld [vmem:[#allocation3 + $0x40] sm:$0xff] }
 0x2ca   :  { %v1154_v2 = vmul.f32 1.442695, %v1123_v10  ;;  %v4196_v10 = vsub.f32 %v3587_v1, %v3597_v0  ;;  %v4199_v1 = vld [vmem:[#allocation20_spill] sm:$0xff] }
 0x2cc   :  { %v1920_v24 = vpop.eup %1919  ;;  %1921 = vpow2.f32 %v1154_v2  ;;  %v998_v2 = vmul.f32 1.442695, %v4196_v10 }
 0x2cd   :  { %1361 = vadd.xlane.f32.xlu1 %v1331_v61  ;;  %v1199_v29 = vmul.f32 %v1920_v24, %v1788_v39  ;;  %1923 = vpow2.f32 %v996_v11  ;;  %v4200_v11 = vsub.f32 %v4199_v1, %v3612_v53  ;;  %v1209_v53 = vld [vmem:[#allocation3 + $0x28] sm:$0xff] }
 0x2ce   :  { %1925 = vpow2.f32 %v1004_v5 }
 0x2cf   :  { %1258 = vadd.xlane.f32.xlu0 %v1199_v29 }
 0x2d2   :  { %v1922_v33 = vpop.eup %1921 }
 0x2d3   :  { %v1203_v44 = vmul.f32 %v1922_v33, %v1792_v37  ;;  %v1924_v52 = vpop.eup %1923  ;;  %v4197_v37 = vld [vmem:[#allocation21_spill] sm:$0xff] }
 0x2d4   :  { %v1220_v6 = vmul.f32 %v1924_v52, %v1204_v9  ;;  %v1926_v31 = vpop.eup %1925  ;;  %v4198_v33 = vsub.f32 %v3609_v43, %v4197_v37  ;;  %v4204_v9 = vld [vmem:[#allocation28_spill] sm:$0xff] }
 0x2d5   :  { %1266 = vadd.xlane.f32.xlu2 %v1203_v44  ;;  %v1224_v30 = vmul.f32 %v1926_v31, %v1208_v54  ;;  %v1205_v31 = vld [vmem:[#allocation3 + $0x8] sm:$0xff] }
 0x2d6   :  { %v1006_v44 = vmul.f32 1.442695, %v4198_v33 }
 0x2d7   :  { %1357 = vadd.xlane.f32.xlu0 %v1329_v21 }
 0x2dd   :  { %1443 = vadd.xlane.f32.xlu2 %v1776_v35  ;;  %v1014_v35 = vmul.f32 1.442695, %v4200_v11 }
 0x2df   :  { %1363 = vadd.xlane.f32.xlu0 %v1332_v34  ;;  %v4201_v34 = vld [vmem:[#allocation19_spill] sm:$0xff] }
 0x2e0   :  { %v4203_v5 = vsub.f32 %v4201_v34, %v4202_v59  ;;  %v1214_v34 = vld [vmem:[#allocation3 + $0x50] sm:$0xff] }
 0x2e1   :  { %v1210_v59 = vld [vmem:[#allocation3 + $0x30] sm:$0xff] }
 0x2e5   :  { %1359 = vadd.xlane.f32.xlu2 %v1330_v23  ;;  %v1022_v23 = vmul.f32 1.442695, %v4203_v5 }
 0x2e8   :  { %v1237_v14 = vpop.xlane.xlu2 %1236 }
 0x2e9   :  { %v1268_v55 = vadd.f32 %v1237_v14, %v1220_v6  ;;  %v4205_v6 = vsub.f32 %v3637_v60, %v4204_v9  ;;  %v4210_v60 = vld [vmem:[#allocation32_spill] sm:$0xff] }
 0x2eb   :  { %1285 = vst.msk [vmem:[#allocation3] sm:$0xff] %vm39_vm1, %v1268_v55  ;;  %v1000_v14 = vmul.f32 1.442695, %v4205_v6  ;;  %v1218_v6 = vld [vmem:[#allocation3 + $0x70] sm:$0xff] }
 0x2f0   :  { %v1245_v42 = vpop.xlane.xlu1 %1244 }
 0x2f1   :  { %v1272_v7 = vadd.f32 %v1245_v42, %v1224_v30 }
 0x2f2   :  { %v1528_v12 = vld [vmem:[#allocation3] sm:$0xff] }
 0x2f3   :  { %v1544_v49 = vadd.f32 1e-08, %v1528_v12  ;;  %1289 = vst.msk [vmem:[#allocation3 + $0x20] sm:$0xff] %vm39_vm1, %v1272_v7  ;;  %v4206_v12 = vld [vmem:[#allocation23_spill] sm:$0xff] }
 0x2f5   :  { %1927 = vlog2.f32 %v1544_v49  ;;  %v4207_v49 = vld [vmem:[#allocation22_spill] sm:$0xff] }
 0x2f6   :  { %1929 = vrcp.f32 %v1608_v56  ;;  %v4208_v56 = vsub.f32 %v4206_v12, %v4207_v49  ;;  %v4221_v49 = vld [vmem:[#allocation33_spill] sm:$0xff] }
 0x2fa   :  { %v1532_v40 = vld [vmem:[#allocation3 + $0x20] sm:$0xff] }
 0x2fb   :  { %v1928_v22 = vpop.eup %1927  ;;  %v1548_v50 = vadd.f32 1e-08, %v1532_v40  ;;  %v1008_v40 = vmul.f32 1.442695, %v4208_v56  ;;  %v4222_v56 = vld [vmem:[#allocation35_spill] sm:$0xff] }
 0x2fc   :  { %v1561_v4 = vmul.f32 0.6931472, %v1928_v22  ;;  %v1930_v48 = vpop.eup %1929 }
 0x2fd   :  { %1931 = vlog2.f32 %v1548_v50 }
 0x2fe   :  { %v1592_v62 = vadd.f32 %v1561_v4, %v1512_v3  ;;  %1933 = vpow2.f32 %v1012_v27  ;;  %v4211_v27 = vsub.f32 %v4209_v28, %v4210_v60 }
 0x2ff   :  { %1935 = vrcp.f32 %v1612_v18 }
 0x300   :  { %v1656_v41 = vmul.f32 %v1592_v62, %v3288_v26  ;;  %1937 = vpow2.f32 %v1020_v16  ;;  %v1016_v4 = vmul.f32 1.442695, %v4211_v27  ;;  %v4214_v16 = vld [vmem:[#allocation30_spill] sm:$0xff] }
 0x301   :  { %1939 = vpow2.f32 %v998_v2 }
 0x302   :  { %v1672_v38 = vsub.f32 %v1640_v45, %v1656_v41  ;;  %1941 = vpow2.f32 %v1006_v44  ;;  %v4212_v41 = vld [vmem:[#allocation13_spill] sm:$0xff] }
 0x303   :  { %v1932_v63 = vpop.eup %1931  ;;  %1943 = vpow2.f32 %v1014_v35  ;;  %v1616_v18 = vmax.f32 %v4212_v41, 1e-08 }
 0x304   :  { %v1688_v19 = vmul.f32 %v1930_v48, %v1672_v38  ;;  %v1569_v46 = vmul.f32 0.6931472, %v1932_v63  ;;  %v1934_v15 = vpop.eup %1933  ;;  %1945 = vpow2.f32 %v1022_v23  ;;  %v4215_v38 = vsub.f32 %v4213_v13, %v4214_v16 }
 0x305   :  { %v1228_v51 = vmul.f32 %v1934_v15, %v1212_v17  ;;  %v1936_v58 = vpop.eup %1935  ;;  %v1520_v17 = vld [vmem:[#allocation2 + $0x40] sm:$0xff] }
 0x306   :  { %v1704_v36 = vmul.f32 -1.0, %v1688_v19  ;;  %v1596_v47 = vadd.f32 %v1569_v46, %v1516_v20  ;;  %v1938_v29 = vpop.eup %1937  ;;  %v1024_v63 = vmul.f32 1.442695, %v4215_v38  ;;  %v1217_v19 = vld [vmem:[#allocation3 + $0x68] sm:$0xff] }
 0x307   :  { %v1232_v32 = vmul.f32 %v1938_v29, %v1216_v57  ;;  %v1940_v52 = vpop.eup %1939  ;;  %v1213_v46 = vld [vmem:[#allocation3 + $0x48] sm:$0xff]  ;;  %v4217_v29 = vld [vmem:[#allocation36_spill] sm:$0xff] }
 0x308   :  { %1720 = vst.msk [vmem:[%s3990_s4] sm:$0xff] %vm39_vm1, %v1704_v36  ;;  %v1660_v26 = vmul.f32 %v1596_v47, %v3450_v8  ;;  %v1942_v30 = vpop.eup %1941  ;;  %v1221_v42 = vmul.f32 %v1940_v52, %v1205_v31  ;;  %v1206_v47 = vld [vmem:[#allocation3 + $0x10] sm:$0xff]  ;;  %v1513_v38 = vld [vmem:[#allocation2 + $0x8] sm:$0xff] }
 0x309   :  { %v1225_v50 = vmul.f32 %v1942_v30, %v1209_v53  ;;  %v1944_v62 = vpop.eup %1943  ;;  %v4220_v30 = vld [vmem:[#allocation12_spill] sm:$0xff] }
 0x30a   :  { %v1676_v39 = vsub.f32 %v1644_v25, %v1660_v26  ;;  %v1253_v61 = vpop.xlane.xlu0 %1252  ;;  %v1946_v48 = vpop.eup %1945  ;;  %v1229_v25 = vmul.f32 %v1944_v62, %v1213_v46  ;;  %v1613_v53 = vmax.f32 %v4220_v30, 1e-08 }
 0x30b   :  { %v1276_v24 = vadd.f32 %v1253_v61, %v1228_v51  ;;  %v1233_v26 = vmul.f32 %v1946_v48, %v1217_v19 }
 0x30c   :  { %v1692_v21 = vmul.f32 %v1936_v58, %v1676_v39 }
 0x30d   :  { %1293 = vst.msk [vmem:[#allocation3 + $0x40] sm:$0xff] %vm39_vm1, %v1276_v24  ;;  %v4216_v24 = vld [vmem:[#allocation34_spill] sm:$0xff] }
 0x30e   :  { %v1708_v8 = vmul.f32 -1.0, %v1692_v21  ;;  %v4218_v37 = vsub.f32 %v4216_v24, %v4217_v29  ;;  %v1645_v24 = vld [vmem:[#allocation4 + $0x28] sm:$0xff] }
 0x310   :  { %1724 = vst.msk [vmem:[%s3990_s4 + $0x20] sm:$0xff] %vm39_vm1, %v1708_v8  ;;  %v1261_v0 = vpop.xlane.xlu2 %1260  ;;  %v1010_v33 = vmul.f32 1.442695, %v4218_v37 }
 0x311   :  { %v1280_v43 = vadd.f32 %v1261_v0, %v1232_v32  ;;  %v1648_v32 = vld [vmem:[#allocation4 + $0x40] sm:$0xff] }
 0x313   :  { %1297 = vst.msk [vmem:[#allocation3 + $0x60] sm:$0xff] %vm39_vm1, %v1280_v43 }
 0x314   :  { %v1536_v55 = vld [vmem:[#allocation3 + $0x40] sm:$0xff] }
 0x315   :  { %v1552_v54 = vadd.f32 1e-08, %v1536_v55 }
 0x317   :  { %1947 = vlog2.f32 %v1552_v54 }
 0x318   :  { %1949 = vpow2.f32 %v1000_v14  ;;  %v1239_v7 = vpop.xlane.xlu1 %1238  ;;  %v4219_v14 = vld [vmem:[#allocation10_spill] sm:$0xff] }
 0x319   :  { %v1269_v22 = vadd.f32 %v1239_v7, %v1221_v42  ;;  %1951 = vpow2.f32 %v1008_v40  ;;  %v1609_v55 = vmax.f32 %v4219_v14, 1e-08  ;;  %v4223_v40 = vsub.f32 %v4221_v49, %v4222_v56  ;;  %v4230_v49 = vld [vmem:[#allocation27_spill] sm:$0xff] }
 0x31a   :  { %v1247_v3 = vpop.xlane.xlu0 %1246  ;;  %1953 = vpow2.f32 %v1016_v4  ;;  %v1618_v56 = vmax.f32 %v4230_v49, 1e-08 }
 0x31b   :  { %1286 = vst.msk [vmem:[#allocation3 + $0x8] sm:$0xff] %vm39_vm1, %v1269_v22  ;;  %v1273_v45 = vadd.f32 %v1247_v3, %v1225_v50  ;;  %1955 = vrcp.f32 %v1616_v18  ;;  %v1002_v22 = vmul.f32 1.442695, %v4223_v40 }
 0x31c   :  { %1957 = vpow2.f32 %v1024_v63 }
 0x31d   :  { %v1948_v20 = vpop.eup %1947  ;;  %1290 = vst.msk [vmem:[#allocation3 + $0x28] sm:$0xff] %vm39_vm1, %v1273_v45 }
 0x31e   :  { %v1950_v15 = vpop.eup %1949  ;;  %v1577_v36 = vmul.f32 0.6931472, %v1948_v20  ;;  %v4224_v20 = vld [vmem:[#allocation9_spill] sm:$0xff] }
 0x31f   :  { %v1222_v58 = vmul.f32 %v1950_v15, %v1206_v47  ;;  %v1952_v8 = vpop.eup %1951  ;;  %v1610_v15 = vmax.f32 %v4224_v20, 1e-08 }
 0x320   :  { %v1600_v51 = vadd.f32 %v1577_v36, %v1520_v17  ;;  %v1263_v10 = vpop.xlane.xlu1 %1262  ;;  %v1255_v2 = vpop.xlane.xlu2 %1254  ;;  %v1226_v54 = vmul.f32 %v1952_v8, %v1210_v59  ;;  %v1517_v36 = vld [vmem:[#allocation2 + $0x28] sm:$0xff] }
 0x321   :  { %v1281_v39 = vadd.f32 %v1263_v10, %v1233_v26  ;;  %v1277_v61 = vadd.f32 %v1255_v2, %v1229_v25  ;;  %v1954_v11 = vpop.eup %1953  ;;  %v4225_v17 = vld [vmem:[#allocation26_spill] sm:$0xff] }
 0x322   :  { %v1664_v44 = vmul.f32 %v1600_v51, %v4212_v41  ;;  %v1529_v21 = vld [vmem:[#allocation3 + $0x8] sm:$0xff]  ;;  %v1241_v57 = vpop.xlane.xlu0 %1240  ;;  %v1956_v5 = vpop.eup %1955  ;;  %v1230_v31 = vmul.f32 %v1954_v11, %v1214_v34  ;;  %v1211_v41 = vld [vmem:[#allocation3 + $0x38] sm:$0xff]  ;;  %v1617_v26 = vmax.f32 %v4225_v17, 1e-08 }
 0x323   :  { %v1545_v0 = vadd.f32 1e-08, %v1529_v21  ;;  %1298 = vst.msk [vmem:[#allocation3 + $0x68] sm:$0xff] %vm39_vm1, %v1281_v39  ;;  %v1270_v1 = vadd.f32 %v1241_v57, %v1222_v58  ;;  %v1958_v52 = vpop.eup %1957  ;;  %v1641_v39 = vld [vmem:[#allocation4 + $0x8] sm:$0xff]  ;;  %v4226_v21 = vld [vmem:[#allocation37_spill] sm:$0xff] }
 0x324   :  { %v1680_v35 = vsub.f32 %v1648_v32, %v1664_v44  ;;  %v1533_v43 = vld [vmem:[#allocation3 + $0x28] sm:$0xff]  ;;  %1294 = vst.msk [vmem:[#allocation3 + $0x48] sm:$0xff] %vm39_vm1, %v1277_v61  ;;  %v1234_v60 = vmul.f32 %v1958_v52, %v1218_v6 }
 0x325   :  { %1959 = vlog2.f32 %v1545_v0  ;;  %v1549_v23 = vadd.f32 1e-08, %v1533_v43  ;;  %1287 = vst.msk [vmem:[#allocation3 + $0x10] sm:$0xff] %vm39_vm1, %v1270_v1  ;;  %v4227_v57 = vld [vmem:[#allocation38_spill] sm:$0xff] }
 0x326   :  { %1961 = vpow2.f32 %v1010_v33  ;;  %v1696_v9 = vmul.f32 %v1956_v5, %v1680_v35  ;;  %v4228_v8 = vsub.f32 %v4226_v21, %v4227_v57  ;;  %v1207_v5 = vld [vmem:[#allocation3 + $0x18] sm:$0xff]  ;;  %v1521_v6 = vld [vmem:[#allocation2 + $0x48] sm:$0xff]  ;;  %v4234_v21 = vld [vmem:[#allocation17_spill] sm:$0xff] }
 0x327   :  { %1963 = vlog2.f32 %v1549_v23  ;;  %v1615_v57 = vmax.f32 %v4234_v21, 1e-08 }
 0x328   :  { %v1712_v42 = vmul.f32 -1.0, %v1696_v9  ;;  %v1257_v7 = vpop.xlane.xlu1 %1256  ;;  %v1249_v12 = vpop.xlane.xlu2 %1248  ;;  %1965 = vrcp.f32 %v1609_v55  ;;  %v1018_v32 = vmul.f32 1.442695, %v4228_v8  ;;  %v4235_v8 = vld [vmem:[#allocation24_spill] sm:$0xff] }
 0x329   :  { %v1278_v50 = vadd.f32 %v1257_v7, %v1230_v31  ;;  %v1274_v28 = vadd.f32 %v1249_v12, %v1226_v54  ;;  %1967 = vrcp.f32 %v1613_v53  ;;  %v1312_v54 = vld [vmem:[#allocation4 + $0x58] sm:$0xff] }
 0x32a   :  { %1728 = vst.msk [vmem:[%s3990_s4 + $0x40] sm:$0xff] %vm39_vm1, %v1712_v42  ;;  %v1265_v27 = vpop.xlane.xlu0 %1264  ;;  %1969 = vpow2.f32 %v1002_v22  ;;  %v1514_v42 = vld [vmem:[#allocation2 + $0x10] sm:$0xff] }
 0x32b   :  { %v1960_v4 = vpop.eup %1959  ;;  %v1537_v3 = vld [vmem:[#allocation3 + $0x48] sm:$0xff]  ;;  %1295 = vst.msk [vmem:[#allocation3 + $0x50] sm:$0xff] %vm39_vm1, %v1278_v50  ;;  %v1282_v62 = vadd.f32 %v1265_v27, %v1234_v60 }
 0x32c   :  { %v1962_v18 = vpop.eup %1961  ;;  %v1563_v45 = vmul.f32 0.6931472, %v1960_v4  ;;  %v1553_v48 = vadd.f32 1e-08, %v1537_v3  ;;  %v1530_v13 = vld [vmem:[#allocation3 + $0x10] sm:$0xff]  ;;  %1291 = vst.msk [vmem:[#allocation3 + $0x30] sm:$0xff] %vm39_vm1, %v1274_v28 }
 0x32d   :  { %v1964_v16 = vpop.eup %1963  ;;  %v1546_v63 = vadd.f32 1e-08, %v1530_v13  ;;  %1299 = vst.msk [vmem:[#allocation3 + $0x70] sm:$0xff] %vm39_vm1, %v1282_v62  ;;  %v1227_v47 = vmul.f32 %v1962_v18, %v1211_v41  ;;  %v1649_v41 = vld [vmem:[#allocation4 + $0x48] sm:$0xff]  ;;  %v4231_v18 = vld [vmem:[#allocation39_spill] sm:$0xff] }
 0x32e   :  { %v1593_v19 = vadd.f32 %v1563_v45, %v1513_v38  ;;  %v1571_v46 = vmul.f32 0.6931472, %v1964_v16  ;;  %1971 = vlog2.f32 %v1553_v48  ;;  %v1966_v2 = vpop.eup %1965  ;;  %v4232_v45 = vld [vmem:[#allocation40_spill] sm:$0xff] }
 0x32f   :  { %1973 = vlog2.f32 %v1546_v63  ;;  %v1968_v58 = vpop.eup %1967  ;;  %v4233_v48 = vsub.f32 %v4231_v18, %v4232_v45  ;;  %v1313_v18 = vld [vmem:[#allocation4 + $0x60] sm:$0xff]  ;;  %v1647_v45 = vld [vmem:[#allocation4 + $0x38] sm:$0xff] }
 0x330   :  { %v1657_v25 = vmul.f32 %v1593_v19, %v4219_v14  ;;  %v1597_v51 = vadd.f32 %v1571_v46, %v1517_v36  ;;  %v1251_v10 = vpop.xlane.xlu1 %1250  ;;  %v1970_v44 = vpop.eup %1969  ;;  %1975 = vrcp.f32 %v1610_v15  ;;  %v1642_v19 = vld [vmem:[#allocation4 + $0x10] sm:$0xff]  ;;  %v1540_v46 = vld [vmem:[#allocation3 + $0x60] sm:$0xff] }
 0x331   :  { %v1275_v61 = vadd.f32 %v1251_v10, %v1227_v47  ;;  %1977 = vrcp.f32 %v1617_v26  ;;  %v1223_v12 = vmul.f32 %v1970_v44, %v1207_v5  ;;  %v1026_v13 = vmul.f32 1.442695, %v4233_v48 }
 0x332   :  { %v1673_v29 = vsub.f32 %v1641_v39, %v1657_v25  ;;  %v1661_v37 = vmul.f32 %v1597_v51, %v4220_v30  ;;  %v1538_v33 = vld [vmem:[#allocation3 + $0x50] sm:$0xff] }
 0x333   :  { %v1554_v0 = vadd.f32 1e-08, %v1538_v33  ;;  %v1534_v1 = vld [vmem:[#allocation3 + $0x30] sm:$0xff]  ;;  %1292 = vst.msk [vmem:[#allocation3 + $0x38] sm:$0xff] %vm39_vm1, %v1275_v61  ;;  %v1556_v61 = vadd.f32 1e-08, %v1540_v46 }
 0x334   :  { %v1972_v11 = vpop.eup %1971  ;;  %v1689_v35 = vmul.f32 %v1966_v2, %v1673_v29  ;;  %v1677_v43 = vsub.f32 %v1645_v24, %v1661_v37  ;;  %v1550_v34 = vadd.f32 1e-08, %v1534_v1  ;;  %v1542_v59 = vld [vmem:[#allocation3 + $0x70] sm:$0xff]  ;;  %v1215_v37 = vld [vmem:[#allocation3 + $0x58] sm:$0xff] }
 0x335   :  { %v1974_v23 = vpop.eup %1973  ;;  %v1579_v52 = vmul.f32 0.6931472, %v1972_v11  ;;  %1979 = vlog2.f32 %v1554_v0  ;;  %v1558_v9 = vadd.f32 1e-08, %v1542_v59  ;;  %v4229_v30 = vld [vmem:[#allocation11_spill] sm:$0xff] }
 0x336   :  { %v1705_v14 = vmul.f32 -1.0, %v1689_v35  ;;  %v1693_v55 = vmul.f32 %v1968_v58, %v1677_v43  ;;  %v1565_v31 = vmul.f32 0.6931472, %v1974_v23  ;;  %1981 = vlog2.f32 %v1550_v34  ;;  %v1976_v60 = vpop.eup %1975  ;;  %v1522_v51 = vld [vmem:[#allocation2 + $0x50] sm:$0xff] }
 0x337   :  { %v1614_v53 = vmax.f32 %v4229_v30, 1e-08  ;;  %1983 = vpow2.f32 %v1018_v32  ;;  %v1601_v7 = vadd.f32 %v1579_v52, %v1521_v6  ;;  %v1978_v62 = vpop.eup %1977  ;;  %v1518_v39 = vld [vmem:[#allocation2 + $0x30] sm:$0xff]  ;;  %v1622_v32 = vmax.f32 %v4235_v8, 1e-08 }
 0x338   :  { %1721 = vst.msk [vmem:[%s3990_s4 + $0x8] sm:$0xff] %vm39_vm1, %v1705_v14  ;;  %v1709_v40 = vmul.f32 -1.0, %v1693_v55  ;;  %v1594_v22 = vadd.f32 %v1565_v31, %v1514_v42  ;;  %1985 = vlog2.f32 %v1558_v9  ;;  %v1356_v50 = vpop.xlane.xlu1 %1355  ;;  %v1243_v28 = vpop.xlane.xlu2 %1242  ;;  %v1315_v29 = vld [vmem:[#allocation4 + $0x70] sm:$0xff] }
 0x339   :  { %v1665_v27 = vmul.f32 %v1601_v7, %v4225_v17  ;;  %v1376_v4 = vadd.f32 %v1356_v50, %v1312_v54  ;;  %v1271_v3 = vadd.f32 %v1243_v28, %v1223_v12  ;;  %1987 = vrcp.f32 %v1614_v53  ;;  %v1650_v43 = vld [vmem:[#allocation4 + $0x50] sm:$0xff] }
 0x33a   :  { %1725 = vst.msk [vmem:[%s3990_s4 + $0x28] sm:$0xff] %vm39_vm1, %v1709_v40  ;;  %v1658_v16 = vmul.f32 %v1594_v22, %v4224_v20  ;;  %v1535_v38 = vld [vmem:[#allocation3 + $0x38] sm:$0xff]  ;;  %1989 = vrcp.f32 %v1618_v56  ;;  %v1646_v9 = vld [vmem:[#allocation4 + $0x30] sm:$0xff] }
 0x33b   :  { %v1980_v63 = vpop.eup %1979  ;;  %v1681_v15 = vsub.f32 %v1649_v41, %v1665_v27  ;;  %v1551_v36 = vadd.f32 1e-08, %v1535_v38  ;;  %1392 = vst.msk [vmem:[#allocation4 + $0x58] sm:$0xff] %vm39_vm1, %v1376_v4  ;;  %v1526_v42 = vld [vmem:[#allocation2 + $0x70] sm:$0xff]  ;;  %v1219_v56 = vld [vmem:[#allocation3 + $0x78] sm:$0xff] }
 0x33c   :  { %v1982_v47 = vpop.eup %1981  ;;  %v1674_v17 = vsub.f32 %v1642_v19, %v1658_v16  ;;  %v1581_v26 = vmul.f32 0.6931472, %v1980_v63  ;;  %1288 = vst.msk [vmem:[#allocation3 + $0x18] sm:$0xff] %vm39_vm1, %v1271_v3  ;;  %v1519_v40 = vld [vmem:[#allocation2 + $0x38] sm:$0xff]  ;;  %v4236_v38 = vld [vmem:[#allocation15_spill] sm:$0xff] }
 0x33d   :  { %v1984_v25 = vpop.eup %1983  ;;  %v1697_v10 = vmul.f32 %v1978_v62, %v1681_v15  ;;  %v1573_v2 = vmul.f32 0.6931472, %v1982_v47  ;;  %1991 = vlog2.f32 %v1551_v36  ;;  %v1611_v63 = vmax.f32 %v4236_v38, 1e-08 }
 0x33e   :  { %v1986_v20 = vpop.eup %1985  ;;  %1993 = vpow2.f32 %v1026_v13  ;;  %v1690_v58 = vmul.f32 %v1976_v60, %v1674_v17  ;;  %v1602_v24 = vadd.f32 %v1581_v26, %v1522_v51  ;;  %v1231_v23 = vmul.f32 %v1984_v25, %v1215_v37  ;;  %v1541_v17 = vld [vmem:[#allocation3 + $0x68] sm:$0xff]  ;;  %v1515_v37 = vld [vmem:[#allocation2 + $0x18] sm:$0xff] }
 0x33f   :  { %v1713_v33 = vmul.f32 -1.0, %v1697_v10  ;;  %v1598_v44 = vadd.f32 %v1573_v2, %v1518_v39  ;;  %v1988_v35 = vpop.eup %1987  ;;  %v1589_v59 = vmul.f32 0.6931472, %v1986_v20  ;;  %1995 = vlog2.f32 %v1556_v61  ;;  %v4237_v10 = vld [vmem:[#allocation25_spill] sm:$0xff] }
 0x340   :  { %v1706_v0 = vmul.f32 -1.0, %v1690_v58  ;;  %v1666_v1 = vmul.f32 %v1602_v24, %v4230_v49  ;;  %v1362_v11 = vpop.xlane.xlu1 %1361  ;;  %v1990_v52 = vpop.eup %1989  ;;  %1997 = vrcp.f32 %v1615_v57  ;;  %v1620_v2 = vmax.f32 %v4237_v10, 1e-08 }
 0x341   :  { %1729 = vst.msk [vmem:[%s3990_s4 + $0x48] sm:$0xff] %vm39_vm1, %v1713_v33  ;;  %v1662_v34 = vmul.f32 %v1598_v44, %v4229_v30  ;;  %v1379_v5 = vadd.f32 %v1362_v11, %v1315_v29  ;;  %1999 = vrcp.f32 %v1622_v32  ;;  %v1606_v50 = vadd.f32 %v1589_v59, %v1526_v42  ;;  %v1524_v29 = vld [vmem:[#allocation2 + $0x60] sm:$0xff]  ;;  %v1643_v59 = vld [vmem:[#allocation4 + $0x18] sm:$0xff] }
 0x342   :  { %1722 = vst.msk [vmem:[%s3990_s4 + $0x10] sm:$0xff] %vm39_vm1, %v1706_v0  ;;  %v1682_v6 = vsub.f32 %v1650_v43, %v1666_v1  ;;  %v1259_v14 = vpop.xlane.xlu0 %1258  ;;  %v1557_v33 = vadd.f32 1e-08, %v1541_v17  ;;  %v1316_v1 = vld [vmem:[#allocation4 + $0x78] sm:$0xff] }
 0x343   :  { %v1992_v55 = vpop.eup %1991  ;;  %v1678_v31 = vsub.f32 %v1646_v9, %v1662_v34  ;;  %v1531_v54 = vld [vmem:[#allocation3 + $0x18] sm:$0xff]  ;;  %1395 = vst.msk [vmem:[#allocation4 + $0x70] sm:$0xff] %vm39_vm1, %v1379_v5  ;;  %v1279_v53 = vadd.f32 %v1259_v14, %v1231_v23  ;;  %v1670_v48 = vmul.f32 %v1606_v50, %v4235_v8 }
 0x344   :  { %v1994_v30 = vpop.eup %1993  ;;  %v1698_v7 = vmul.f32 %v1990_v52, %v1682_v6  ;;  %v1575_v12 = vmul.f32 0.6931472, %v1992_v55  ;;  %v1547_v49 = vadd.f32 1e-08, %v1531_v54  ;;  %v4238_v43 = vld [vmem:[#allocation16_spill] sm:$0xff] }
 0x345   :  { %v1694_v22 = vmul.f32 %v1988_v35, %v1678_v31  ;;  %1296 = vst.msk [vmem:[#allocation3 + $0x58] sm:$0xff] %vm39_vm1, %v1279_v53  ;;  %v1235_v4 = vmul.f32 %v1994_v30, %v1219_v56  ;;  %v1996_v3 = vpop.eup %1995  ;;  %v1619_v34 = vmax.f32 %v4238_v43, 1e-08 }
 0x346   :  { %v1714_v28 = vmul.f32 -1.0, %v1698_v7  ;;  %v1599_v60 = vadd.f32 %v1575_v12, %v1519_v40  ;;  %2001 = vlog2.f32 %v1547_v49  ;;  %v1998_v16 = vpop.eup %1997  ;;  %v1585_v47 = vmul.f32 0.6931472, %v1996_v3  ;;  %v1314_v12 = vld [vmem:[#allocation4 + $0x68] sm:$0xff]  ;;  %v1523_v49 = vld [vmem:[#allocation2 + $0x58] sm:$0xff] }
 0x347   :  { %v1710_v27 = vmul.f32 -1.0, %v1694_v22  ;;  %v2000_v36 = vpop.eup %1999  ;;  %2003 = vrcp.f32 %v1611_v63 }
 0x348   :  { %1730 = vst.msk [vmem:[%s3990_s4 + $0x50] sm:$0xff] %vm39_vm1, %v1714_v28  ;;  %v1663_v62 = vmul.f32 %v1599_v60, %v4234_v21  ;;  %v1267_v41 = vpop.xlane.xlu2 %1266  ;;  %v1412_v21 = vld [vmem:[#allocation5 + $0x78] sm:$0xff]  ;;  %v1604_v32 = vadd.f32 %v1585_v47, %v1524_v29 }
 0x349   :  { %1726 = vst.msk [vmem:[%s3990_s4 + $0x30] sm:$0xff] %vm39_vm1, %v1710_v27  ;;  %v1283_v13 = vadd.f32 %v1267_v41, %v1235_v4 }
 0x34a   :  { %v1679_v19 = vsub.f32 %v1647_v45, %v1663_v62  ;;  %v1654_v46 = vld [vmem:[#allocation4 + $0x70] sm:$0xff]  ;;  %v1358_v15 = vpop.xlane.xlu0 %1357  ;;  %v1668_v6 = vmul.f32 %v1604_v32, %v4237_v10 }
 0x34b   :  { %v1686_v26 = vsub.f32 %v1654_v46, %v1670_v48  ;;  %1300 = vst.msk [vmem:[#allocation3 + $0x78] sm:$0xff] %vm39_vm1, %v1283_v13  ;;  %v1377_v25 = vadd.f32 %v1358_v15, %v1313_v18  ;;  %v1651_v18 = vld [vmem:[#allocation4 + $0x58] sm:$0xff]  ;;  %v4239_v48 = vld [vmem:[#allocation14_spill] sm:$0xff] }
 0x34c   :  { %v2002_v51 = vpop.eup %2001  ;;  %v1695_v20 = vmul.f32 %v1998_v16, %v1679_v19  ;;  %v1539_v39 = vld [vmem:[#allocation3 + $0x58] sm:$0xff]  ;;  %v1621_v13 = vmax.f32 %v4239_v48, 1e-08  ;;  %v1525_v46 = vld [vmem:[#allocation2 + $0x68] sm:$0xff] }
 0x34d   :  { %v1567_v61 = vmul.f32 0.6931472, %v2002_v51  ;;  %v1702_v58 = vmul.f32 %v2000_v36, %v1686_v26  ;;  %v1555_v24 = vadd.f32 1e-08, %v1539_v39  ;;  %1393 = vst.msk [vmem:[#allocation4 + $0x60] sm:$0xff] %vm39_vm1, %v1377_v25  ;;  %v2004_v55 = vpop.eup %2003  ;;  %v1527_v19 = vld [vmem:[#allocation2 + $0x78] sm:$0xff] }
 0x34e   :  { %v1711_v44 = vmul.f32 -1.0, %v1695_v20 }
 0x34f   :  { %v1595_v57 = vadd.f32 %v1567_v61, %v1515_v37  ;;  %v1718_v8 = vmul.f32 -1.0, %v1702_v58  ;;  %2005 = vlog2.f32 %v1555_v24 }
 0x350   :  { %2007 = vrcp.f32 %v1620_v2  ;;  %1727 = vst.msk [vmem:[%s3990_s4 + $0x38] sm:$0xff] %vm39_vm1, %v1711_v44  ;;  %v1444_v0 = vpop.xlane.xlu2 %1443 }
 0x351   :  { %v1659_v11 = vmul.f32 %v1595_v57, %v4236_v38  ;;  %1734 = vst.msk [vmem:[%s3990_s4 + $0x70] sm:$0xff] %vm39_vm1, %v1718_v8  ;;  %v1460_v35 = vadd.f32 %v1444_v0, %v1412_v21  ;;  %2009 = vlog2.f32 %v1557_v33 }
 0x352   :  { %v1543_v5 = vld [vmem:[#allocation3 + $0x78] sm:$0xff]  ;;  %v1364_v23 = vpop.xlane.xlu0 %1363 }
 0x353   :  { %v1675_v52 = vsub.f32 %v1643_v59, %v1659_v11  ;;  %v1559_v9 = vadd.f32 1e-08, %v1543_v5  ;;  %1476 = vst.msk [vmem:[#allocation5 + $0x78] sm:$0xff] %vm39_vm1, %v1460_v35  ;;  %v1380_v14 = vadd.f32 %v1364_v23, %v1316_v1 }
 0x354   :  { %v1652_v31 = vld [vmem:[#allocation4 + $0x60] sm:$0xff] }
 0x355   :  { %v2006_v54 = vpop.eup %2005  ;;  %v1691_v53 = vmul.f32 %v2004_v55, %v1675_v52  ;;  %2011 = vlog2.f32 %v1559_v9  ;;  %v1684_v30 = vsub.f32 %v1652_v31, %v1668_v6  ;;  %1396 = vst.msk [vmem:[#allocation4 + $0x78] sm:$0xff] %vm39_vm1, %v1380_v14 }
 0x356   :  { %v2008_v42 = vpop.eup %2007  ;;  %v1583_v7 = vmul.f32 0.6931472, %v2006_v54  ;;  %2013 = vrcp.f32 %v1619_v34 }
 0x357   :  { %v1707_v56 = vmul.f32 -1.0, %v1691_v53  ;;  %v1700_v40 = vmul.f32 %v2008_v42, %v1684_v30  ;;  %v2010_v22 = vpop.eup %2009 }
 0x358   :  { %v1603_v50 = vadd.f32 %v1583_v7, %v1523_v49  ;;  %v1360_v28 = vpop.xlane.xlu2 %1359  ;;  %v1587_v41 = vmul.f32 0.6931472, %v2010_v22 }
 0x359   :  { %1723 = vst.msk [vmem:[%s3990_s4 + $0x18] sm:$0xff] %vm39_vm1, %v1707_v56  ;;  %v1716_v60 = vmul.f32 -1.0, %v1700_v40  ;;  %v1378_v27 = vadd.f32 %v1360_v28, %v1314_v12 }
 0x35a   :  { %v1667_v4 = vmul.f32 %v1603_v50, %v4238_v43  ;;  %v1511_v3 = vld [vmem:[#allocation5 + $0x78] sm:$0xff]  ;;  %v1605_v47 = vadd.f32 %v1587_v41, %v1525_v46 }
 0x35b   :  { %v2012_v62 = vpop.eup %2011  ;;  %1732 = vst.msk [vmem:[%s3990_s4 + $0x60] sm:$0xff] %vm39_vm1, %v1716_v60  ;;  %v1623_v45 = vmax.f32 %v1511_v3, 1e-08 }
 0x35c   :  { %v1683_v16 = vsub.f32 %v1651_v18, %v1667_v4  ;;  %v1591_v38 = vmul.f32 0.6931472, %v2012_v62  ;;  %1751 = vst.msk [vmem:[%s3991_s5 + $0x78] sm:$0xff] %vm39_vm1, %v1511_v3  ;;  %v2014_v63 = vpop.eup %2013  ;;  %v1655_v25 = vld [vmem:[#allocation4 + $0x78] sm:$0xff]  ;;  %v1669_v2 = vmul.f32 %v1605_v47, %v4239_v48 }
 0x35d   :  { %2015 = vrcp.f32 %v1623_v45  ;;  %1394 = vst.msk [vmem:[#allocation4 + $0x68] sm:$0xff] %vm39_vm1, %v1378_v27 }
 0x35e   :  { %v1699_v15 = vmul.f32 %v2014_v63, %v1683_v16  ;;  %v1607_v36 = vadd.f32 %v1591_v38, %v1527_v19  ;;  %2017 = vrcp.f32 %v1621_v13 }
 0x360   :  { %v1715_v17 = vmul.f32 -1.0, %v1699_v15  ;;  %v1671_v26 = vmul.f32 %v1607_v36, %v1511_v3 }
 0x362   :  { %1731 = vst.msk [vmem:[%s3990_s4 + $0x58] sm:$0xff] %vm39_vm1, %v1715_v17  ;;  %v1687_v51 = vsub.f32 %v1655_v25, %v1671_v26 }
 0x363   :  { %v2016_v10 = vpop.eup %2015 }
 0x364   :  { %v1703_v20 = vmul.f32 %v2016_v10, %v1687_v51  ;;  %v1653_v39 = vld [vmem:[#allocation4 + $0x68] sm:$0xff]  ;;  %v2018_v58 = vpop.eup %2017 }
 0x365   :  { %v1685_v61 = vsub.f32 %v1653_v39, %v1669_v2 }
 0x366   :  { %v1719_v24 = vmul.f32 -1.0, %v1703_v20 }
 0x367   :  { %v1701_v29 = vmul.f32 %v2018_v58, %v1685_v61 }
 0x368   :  { %1735 = vst.msk [vmem:[%s3990_s4 + $0x78] sm:$0xff] %vm39_vm1, %v1719_v24 }
 0x369   :  { %v1717_v37 = vmul.f32 -1.0, %v1701_v29 }
 0x36b   :  { %1733 = vst.msk [vmem:[%s3990_s4 + $0x68] sm:$0xff] %vm39_vm1, %v1717_v37 }
 0x36c   :  { %1760 = vsyncpa [#allocation7], 1 }

</bundles_post_ra>
